<compile_context>
chip_gen: v5e
topology: v5e:2x2
jax: 0.10.0
libtpu: 0.0.40
codegen_flags: <defaults>
</compile_context>

<pallas_src>
import jax
import jax.numpy as jnp
from jax.experimental import pallas as pl
from jax.experimental.pallas import tpu as pltpu

INPUT_SIZE = 10
HIDDEN_SIZE = 64
NUM_LAYERS = 2   # hard-coded as two explicit layers in the kernel
OUTPUT_SIZE = 1


def threat_lstm_kernel(x_ref,      # (T*B, I)   f32, time-major rows (row = t*B + b)
                       wih0w_ref,  # (I, 8H)    bf16, layer-0 input weights scattered
                       b0w_ref,    # (1, 8H)    f32,  into the packed gate layout
                       wrec_ref,   # (2H, 8H)   bf16, fused wavefront recurrent weight
                       brec_ref,   # (1, 8H)    f32,  b1 in layer-1 lanes, 0 elsewhere
                       wfc_ref,    # (1, H)     f32
                       bfc_ref,    # (1, 1)     f32
                       out_ref):   # (B, 1)     f32
    B = out_ref.shape[0]
    TB = x_ref.shape[0]
    T = TB // B
    H = wfc_ref.shape[1]
    H2 = 2 * H                      # packed (layer0|layer1) gate block width = 128

    # ---- Hoisted input projection (all steps, b0 folded), kept as a value.
    #      (T*B, 8H) f32 is only ~8 vregs at these sizes; no VMEM scratch needed.
    xproj = jnp.dot(x_ref[...].astype(jnp.bfloat16), wih0w_ref[...],
                    preferred_element_type=jnp.float32) + b0w_ref[...]

    # Broadcast the fused bias exactly once (broadcasts are not CSE'd).
    b_rec = jnp.broadcast_to(brec_ref[...], (B, 4 * H2))

    def gates(pre, c):
        # Packed gate layout along 8H lanes: [i0 i1 | f0 f1 | o0 o1 | g0 g1].
        # sigmoid = 3 full 128-lane vregs, tanh = 1; the cell update is a single
        # (B, 2H) lane-packed op covering BOTH layers.
        sig = jax.nn.sigmoid(pre[:, :3 * H2])
        g = jnp.tanh(pre[:, 3 * H2:])
        i = sig[:, 0 * H2:1 * H2]
        f = sig[:, 1 * H2:2 * H2]
        o = sig[:, 2 * H2:3 * H2]
        c_new = f * c + i * g
        return o * jnp.tanh(c_new), c_new

    # ---- Prologue: layer-0 at t=0. Layer-1 lanes of xproj are exactly zero, so
    #      the packed update leaves the layer-1 half at (h, c) = 0 exactly.
    h, c = gates(xproj[0:B, :], jnp.zeros((B, H2), jnp.float32))

    # ---- Wavefront recurrence, fully unrolled (T static & small). Invariant:
    #      h == [h0_t | h1_{t-1}] lane-packed, which IS the next matmul LHS.
    #      wrec_ref is read inside the loop on purpose (do not pin 32 vregs).
    for t in range(T):
        fused = jnp.dot(h.astype(jnp.bfloat16), wrec_ref[...],
                        preferred_element_type=jnp.float32) + b_rec
        if t + 1 < T:
            # layer-0 lanes: h0_t @ Whh0 + xproj_{t+1};  layer-1 lanes: pre1_t.
            pre = fused + xproj[(t + 1) * B:(t + 2) * B, :]
        else:
            # last step: the layer-0 half is dead, skip its xproj add.
            pre = fused
        h, c = gates(pre, c)

    # ---- fc head on the last top-layer hidden state: VPU multiply + lane
    #      reduction in f32 (avoids an N=1 MXU push), then sigmoid.
    h1_last = h[:, H:H2]
    logits = jnp.sum(h1_last * wfc_ref[...], axis=1, keepdims=True) + bfc_ref[...]
    out_ref[...] = jax.nn.sigmoid(logits)


def _split_gates(w):
    """Split the trailing 4H axis into PyTorch-ordered gate blocks (i, f, g, o)."""
    h = w.shape[-1] // 4
    return tuple(w[..., k * h:(k + 1) * h] for k in range(4))


def threat_lstm_forward(x, params):
    """x: (B, T, I) float32, batch-first like the PyTorch module."""
    B, T, I = x.shape
    H = params["whh0"].shape[0]

    # Time-major flat rows (row = t*B + b): one input GEMM, static per-step slices.
    x_flat = jnp.transpose(x, (1, 0, 2)).reshape(T * B, I).astype(jnp.float32)

    # PyTorch gate order is (i, f, g, o); kernel block order is (i, f, o, g) so
    # all sigmoid gates form one contiguous lane span and tanh another.
    ih0 = _split_gates(params["wih0"])
    hh0 = _split_gates(params["whh0"])
    b0s = _split_gates(params["b0"])
    ih1 = _split_gates(params["wih1"])
    hh1 = _split_gates(params["whh1"])
    b1s = _split_gates(params["b1"])
    KORD = (0, 1, 3, 2)                      # kernel gates i, f, o, g -> PyTorch idx

    zI = jnp.zeros((I, H), jnp.float32)
    zH = jnp.zeros((H, H), jnp.float32)
    z1 = jnp.zeros((1, H), jnp.float32)

    # Layer-0 input weights/bias scattered into the packed 8H layout
    # (layer-1 lanes zero): per kernel gate block -> [Wih0_gate | 0].
    wih0_wide = jnp.concatenate(
        sum(([ih0[q], zI] for q in KORD), []), axis=1).astype(jnp.bfloat16)
    b0_wide = jnp.concatenate(sum(([b0s[q], z1] for q in KORD), []), axis=1)

    # Fused wavefront recurrent weight: for each gate block,
    #   [[Whh0_g, Wih1_g], [0, Whh1_g]]  of shape (2H, 2H); concat over gates.
    def rec_block(q):
        top = jnp.concatenate([hh0[q], ih1[q]], axis=1)   # rows 0:H  (h0 input)
        bot = jnp.concatenate([zH, hh1[q]], axis=1)       # rows H:2H (h1 input)
        return jnp.concatenate([top, bot], axis=0)

    w_rec = jnp.concatenate([rec_block(q) for q in KORD],
                            axis=1).astype(jnp.bfloat16)            # (2H, 8H)
    b_rec = jnp.concatenate(sum(([z1, b1s[q]] for q in KORD), []), axis=1)  # (1, 8H)

    wfc_row = params["wfc"].T                                        # (1, H)

    vmem = pl.BlockSpec(memory_space=pltpu.MemorySpace.VMEM)
    return pl.pallas_call(
        threat_lstm_kernel,
        out_shape=jax.ShapeDtypeStruct((B, OUTPUT_SIZE), jnp.float32),
        in_specs=[vmem] * 7,
        out_specs=vmem,
    )(x_flat, wih0_wide, b0_wide, w_rec, b_rec, wfc_row, params["bfc"])


def init_params(key, input_size=INPUT_SIZE, hidden_size=HIDDEN_SIZE):
    """Deterministic init, PyTorch-style U(-1/sqrt(H), 1/sqrt(H))."""
    H = hidden_size
    k = 1.0 / jnp.sqrt(jnp.float32(H))
    keys = jax.random.split(key, 12)

    def u(kk, shape):
        return jax.random.uniform(kk, shape, jnp.float32, -k, k)

    # Weights stored pre-transposed relative to PyTorch (kernel does x @ W),
    # gate columns in PyTorch order (i, f, g, o).
    wih0 = u(keys[0], (input_size, 4 * H))
    whh0 = u(keys[1], (H, 4 * H))
    b0 = u(keys[2], (1, 4 * H)) + u(keys[3], (1, 4 * H))      # b_ih0 + b_hh0
    wih1 = u(keys[4], (H, 4 * H))
    whh1 = u(keys[5], (H, 4 * H))
    b1 = u(keys[6], (1, 4 * H)) + u(keys[7], (1, 4 * H))      # b_ih1 + b_hh1
    wfc = u(keys[8], (H, OUTPUT_SIZE))
    bfc = u(keys[9], (1, OUTPUT_SIZE))
    return dict(wih0=wih0, whh0=whh0, b0=b0,
                wih1=wih1, whh1=whh1, b1=b1,
                wfc=wfc, bfc=bfc)


def reference_forward(x, params):
    """Pure-JAX reference (eval-mode PyTorch semantics), PyTorch gate order.
    Matmul operands cast to bf16 to match the kernel's MXU input precision
    (f32 accumulation). NOTE: a strict-f32 PyTorch LSTM would drift slightly
    from this for long sequences (acknowledged, fine at T=8)."""
    B, T, I = x.shape
    H = params["whh0"].shape[0]
    bf = jnp.bfloat16
    wih0 = params["wih0"].astype(bf)
    whh0 = params["whh0"].astype(bf)
    wih1 = params["wih1"].astype(bf)
    whh1 = params["whh1"].astype(bf)

    def cell(x_t, h, c, wih, whh, b):
        pre = (jnp.dot(x_t.astype(bf), wih, preferred_element_type=jnp.float32)
               + jnp.dot(h.astype(bf), whh, preferred_element_type=jnp.float32)
               + b)
        i = jax.nn.sigmoid(pre[:, 0 * H:1 * H])
        f = jax.nn.sigmoid(pre[:, 1 * H:2 * H])
        g = jnp.tanh(pre[:, 2 * H:3 * H])
        o = jax.nn.sigmoid(pre[:, 3 * H:4 * H])
        c = f * c + i * g
        h = o * jnp.tanh(c)
        return h, c

    h0 = jnp.zeros((B, H), jnp.float32)
    c0 = jnp.zeros((B, H), jnp.float32)
    h1 = jnp.zeros((B, H), jnp.float32)
    c1 = jnp.zeros((B, H), jnp.float32)
    for t in range(T):
        x_t = x[:, t, :]
        h0, c0 = cell(x_t, h0, c0, wih0, whh0, params["b0"])
        h1, c1 = cell(h0, h1, c1, wih1, whh1, params["b1"])
    return jax.nn.sigmoid(
        jnp.dot(h1, params["wfc"], preferred_element_type=jnp.float32)
        + params["bfc"])


if __name__ == "__main__":
    key = jax.random.PRNGKey(0)
    k_x, k_p = jax.random.split(key)

    B, T = 2, 8
    x = jax.random.normal(k_x, (B, T, INPUT_SIZE), jnp.float32)
    params = init_params(k_p)

    out = jax.block_until_ready(threat_lstm_forward(x, params))
    ref = reference_forward(x, params)

    assert out.shape == (B, OUTPUT_SIZE)
    assert jnp.allclose(out, ref, atol=1e-3, rtol=1e-3), (out, ref)

    print("KERNEL_OK")
</pallas_src>

<mosaic_0001>
module attributes {stable_mosaic.version = 11 : i64} {
  func.func @threat_lstm_kernel(%arg0: memref<16x10xf32, #tpu.memory_space<vmem>>, %arg1: memref<10x512xbf16, #tpu.memory_space<vmem>>, %arg2: memref<1x512xf32, #tpu.memory_space<vmem>>, %arg3: memref<128x512xbf16, #tpu.memory_space<vmem>>, %arg4: memref<1x512xf32, #tpu.memory_space<vmem>>, %arg5: memref<1x64xf32, #tpu.memory_space<vmem>>, %arg6: memref<1x1xf32, #tpu.memory_space<vmem>>, %arg7: memref<2x1xf32, #tpu.memory_space<vmem>>) attributes {dimension_semantics = [], scalar_prefetch = 0 : i64, scratch_operands = 0 : i64, tpu.core_type = #tpu.core_type<tc>} {
    %c0 = arith.constant 0 : index
    %c0_0 = arith.constant 0 : index
    %0 = vector.load %arg0[%c0, %c0_0] : memref<16x10xf32, #tpu.memory_space<vmem>>, vector<16x10xf32>
    %1 = arith.truncf %0 : vector<16x10xf32> to vector<16x10xbf16>
    %c0_1 = arith.constant 0 : index
    %c0_2 = arith.constant 0 : index
    %2 = vector.load %arg1[%c0_1, %c0_2] : memref<10x512xbf16, #tpu.memory_space<vmem>>, vector<10x512xbf16>
    %cst = arith.constant dense<0.000000e+00> : vector<16x512xf32>
    %3 = tpu.matmul %1, %2, %cst {dimension_numbers = #tpu.dot_dimension_numbers<[1], [0], [0], [1], [0, 0, 1, 1], [], []>} : vector<16x10xbf16>, vector<10x512xbf16>, vector<16x512xf32> -> vector<16x512xf32>
    %c0_3 = arith.constant 0 : index
    %c0_4 = arith.constant 0 : index
    %4 = vector.load %arg2[%c0_3, %c0_4] : memref<1x512xf32, #tpu.memory_space<vmem>>, vector<1x512xf32>
    %5 = vector.broadcast %4 : vector<1x512xf32> to vector<16x512xf32>
    %6 = arith.addf %3, %5 : vector<16x512xf32>
    %c0_5 = arith.constant 0 : index
    %c0_6 = arith.constant 0 : index
    %7 = vector.load %arg4[%c0_5, %c0_6] : memref<1x512xf32, #tpu.memory_space<vmem>>, vector<1x512xf32>
    %8 = vector.shape_cast %7 : vector<1x512xf32> to vector<1x512xf32>
    %9 = vector.broadcast %8 : vector<1x512xf32> to vector<2x512xf32>
    %10 = vector.extract_strided_slice %6 {offsets = [0, 0], sizes = [2, 512], strides = [1, 1]} : vector<16x512xf32> to vector<2x512xf32>
    %cst_7 = arith.constant 0.000000e+00 : f32
    %11 = vector.broadcast %cst_7 : f32 to vector<2x128xf32>
    %12 = vector.extract_strided_slice %10 {offsets = [0, 0], sizes = [2, 384], strides = [1, 1]} : vector<2x512xf32> to vector<2x384xf32>
    %13 = arith.negf %12 : vector<2x384xf32>
    %14 = math.exp %13 : vector<2x384xf32>
    %cst_8 = arith.constant 1.000000e+00 : f32
    %15 = vector.broadcast %cst_8 : f32 to vector<2x384xf32>
    %16 = arith.addf %15, %14 : vector<2x384xf32>
    %17 = arith.divf %15, %16 : vector<2x384xf32>
    %18 = vector.extract_strided_slice %10 {offsets = [0, 384], sizes = [2, 128], strides = [1, 1]} : vector<2x512xf32> to vector<2x128xf32>
    %19 = math.tanh %18 : vector<2x128xf32>
    %20 = vector.extract_strided_slice %17 {offsets = [0, 0], sizes = [2, 128], strides = [1, 1]} : vector<2x384xf32> to vector<2x128xf32>
    %21 = vector.extract_strided_slice %17 {offsets = [0, 128], sizes = [2, 128], strides = [1, 1]} : vector<2x384xf32> to vector<2x128xf32>
    %22 = vector.extract_strided_slice %17 {offsets = [0, 256], sizes = [2, 128], strides = [1, 1]} : vector<2x384xf32> to vector<2x128xf32>
    %23 = arith.mulf %21, %11 : vector<2x128xf32>
    %24 = arith.mulf %20, %19 : vector<2x128xf32>
    %25 = arith.addf %23, %24 : vector<2x128xf32>
    %26 = math.tanh %25 : vector<2x128xf32>
    %27 = arith.mulf %22, %26 : vector<2x128xf32>
    %28 = arith.truncf %27 : vector<2x128xf32> to vector<2x128xbf16>
    %c0_9 = arith.constant 0 : index
    %c0_10 = arith.constant 0 : index
    %29 = vector.load %arg3[%c0_9, %c0_10] : memref<128x512xbf16, #tpu.memory_space<vmem>>, vector<128x512xbf16>
    %cst_11 = arith.constant dense<0.000000e+00> : vector<2x512xf32>
    %30 = tpu.matmul %28, %29, %cst_11 {dimension_numbers = #tpu.dot_dimension_numbers<[1], [0], [0], [1], [0, 0, 1, 1], [], []>} : vector<2x128xbf16>, vector<128x512xbf16>, vector<2x512xf32> -> vector<2x512xf32>
    %31 = arith.addf %30, %9 : vector<2x512xf32>
    %32 = vector.extract_strided_slice %6 {offsets = [2, 0], sizes = [2, 512], strides = [1, 1]} : vector<16x512xf32> to vector<2x512xf32>
    %33 = arith.addf %31, %32 : vector<2x512xf32>
    %34 = vector.extract_strided_slice %33 {offsets = [0, 0], sizes = [2, 384], strides = [1, 1]} : vector<2x512xf32> to vector<2x384xf32>
    %35 = arith.negf %34 : vector<2x384xf32>
    %36 = math.exp %35 : vector<2x384xf32>
    %cst_12 = arith.constant 1.000000e+00 : f32
    %37 = vector.broadcast %cst_12 : f32 to vector<2x384xf32>
    %38 = arith.addf %37, %36 : vector<2x384xf32>
    %39 = arith.divf %37, %38 : vector<2x384xf32>
    %40 = vector.extract_strided_slice %33 {offsets = [0, 384], sizes = [2, 128], strides = [1, 1]} : vector<2x512xf32> to vector<2x128xf32>
    %41 = math.tanh %40 : vector<2x128xf32>
    %42 = vector.extract_strided_slice %39 {offsets = [0, 0], sizes = [2, 128], strides = [1, 1]} : vector<2x384xf32> to vector<2x128xf32>
    %43 = vector.extract_strided_slice %39 {offsets = [0, 128], sizes = [2, 128], strides = [1, 1]} : vector<2x384xf32> to vector<2x128xf32>
    %44 = vector.extract_strided_slice %39 {offsets = [0, 256], sizes = [2, 128], strides = [1, 1]} : vector<2x384xf32> to vector<2x128xf32>
    %45 = arith.mulf %43, %25 : vector<2x128xf32>
    %46 = arith.mulf %42, %41 : vector<2x128xf32>
    %47 = arith.addf %45, %46 : vector<2x128xf32>
    %48 = math.tanh %47 : vector<2x128xf32>
    %49 = arith.mulf %44, %48 : vector<2x128xf32>
    %50 = arith.truncf %49 : vector<2x128xf32> to vector<2x128xbf16>
    %c0_13 = arith.constant 0 : index
    %c0_14 = arith.constant 0 : index
    %51 = vector.load %arg3[%c0_13, %c0_14] : memref<128x512xbf16, #tpu.memory_space<vmem>>, vector<128x512xbf16>
    %cst_15 = arith.constant dense<0.000000e+00> : vector<2x512xf32>
    %52 = tpu.matmul %50, %51, %cst_15 {dimension_numbers = #tpu.dot_dimension_numbers<[1], [0], [0], [1], [0, 0, 1, 1], [], []>} : vector<2x128xbf16>, vector<128x512xbf16>, vector<2x512xf32> -> vector<2x512xf32>
    %53 = arith.addf %52, %9 : vector<2x512xf32>
    %54 = vector.extract_strided_slice %6 {offsets = [4, 0], sizes = [2, 512], strides = [1, 1]} : vector<16x512xf32> to vector<2x512xf32>
    %55 = arith.addf %53, %54 : vector<2x512xf32>
    %56 = vector.extract_strided_slice %55 {offsets = [0, 0], sizes = [2, 384], strides = [1, 1]} : vector<2x512xf32> to vector<2x384xf32>
    %57 = arith.negf %56 : vector<2x384xf32>
    %58 = math.exp %57 : vector<2x384xf32>
    %cst_16 = arith.constant 1.000000e+00 : f32
    %59 = vector.broadcast %cst_16 : f32 to vector<2x384xf32>
    %60 = arith.addf %59, %58 : vector<2x384xf32>
    %61 = arith.divf %59, %60 : vector<2x384xf32>
    %62 = vector.extract_strided_slice %55 {offsets = [0, 384], sizes = [2, 128], strides = [1, 1]} : vector<2x512xf32> to vector<2x128xf32>
    %63 = math.tanh %62 : vector<2x128xf32>
    %64 = vector.extract_strided_slice %61 {offsets = [0, 0], sizes = [2, 128], strides = [1, 1]} : vector<2x384xf32> to vector<2x128xf32>
    %65 = vector.extract_strided_slice %61 {offsets = [0, 128], sizes = [2, 128], strides = [1, 1]} : vector<2x384xf32> to vector<2x128xf32>
    %66 = vector.extract_strided_slice %61 {offsets = [0, 256], sizes = [2, 128], strides = [1, 1]} : vector<2x384xf32> to vector<2x128xf32>
    %67 = arith.mulf %65, %47 : vector<2x128xf32>
    %68 = arith.mulf %64, %63 : vector<2x128xf32>
    %69 = arith.addf %67, %68 : vector<2x128xf32>
    %70 = math.tanh %69 : vector<2x128xf32>
    %71 = arith.mulf %66, %70 : vector<2x128xf32>
    %72 = arith.truncf %71 : vector<2x128xf32> to vector<2x128xbf16>
    %c0_17 = arith.constant 0 : index
    %c0_18 = arith.constant 0 : index
    %73 = vector.load %arg3[%c0_17, %c0_18] : memref<128x512xbf16, #tpu.memory_space<vmem>>, vector<128x512xbf16>
    %cst_19 = arith.constant dense<0.000000e+00> : vector<2x512xf32>
    %74 = tpu.matmul %72, %73, %cst_19 {dimension_numbers = #tpu.dot_dimension_numbers<[1], [0], [0], [1], [0, 0, 1, 1], [], []>} : vector<2x128xbf16>, vector<128x512xbf16>, vector<2x512xf32> -> vector<2x512xf32>
    %75 = arith.addf %74, %9 : vector<2x512xf32>
    %76 = vector.extract_strided_slice %6 {offsets = [6, 0], sizes = [2, 512], strides = [1, 1]} : vector<16x512xf32> to vector<2x512xf32>
    %77 = arith.addf %75, %76 : vector<2x512xf32>
    %78 = vector.extract_strided_slice %77 {offsets = [0, 0], sizes = [2, 384], strides = [1, 1]} : vector<2x512xf32> to vector<2x384xf32>
    %79 = arith.negf %78 : vector<2x384xf32>
    %80 = math.exp %79 : vector<2x384xf32>
    %cst_20 = arith.constant 1.000000e+00 : f32
    %81 = vector.broadcast %cst_20 : f32 to vector<2x384xf32>
    %82 = arith.addf %81, %80 : vector<2x384xf32>
    %83 = arith.divf %81, %82 : vector<2x384xf32>
    %84 = vector.extract_strided_slice %77 {offsets = [0, 384], sizes = [2, 128], strides = [1, 1]} : vector<2x512xf32> to vector<2x128xf32>
    %85 = math.tanh %84 : vector<2x128xf32>
    %86 = vector.extract_strided_slice %83 {offsets = [0, 0], sizes = [2, 128], strides = [1, 1]} : vector<2x384xf32> to vector<2x128xf32>
    %87 = vector.extract_strided_slice %83 {offsets = [0, 128], sizes = [2, 128], strides = [1, 1]} : vector<2x384xf32> to vector<2x128xf32>
    %88 = vector.extract_strided_slice %83 {offsets = [0, 256], sizes = [2, 128], strides = [1, 1]} : vector<2x384xf32> to vector<2x128xf32>
    %89 = arith.mulf %87, %69 : vector<2x128xf32>
    %90 = arith.mulf %86, %85 : vector<2x128xf32>
    %91 = arith.addf %89, %90 : vector<2x128xf32>
    %92 = math.tanh %91 : vector<2x128xf32>
    %93 = arith.mulf %88, %92 : vector<2x128xf32>
    %94 = arith.truncf %93 : vector<2x128xf32> to vector<2x128xbf16>
    %c0_21 = arith.constant 0 : index
    %c0_22 = arith.constant 0 : index
    %95 = vector.load %arg3[%c0_21, %c0_22] : memref<128x512xbf16, #tpu.memory_space<vmem>>, vector<128x512xbf16>
    %cst_23 = arith.constant dense<0.000000e+00> : vector<2x512xf32>
    %96 = tpu.matmul %94, %95, %cst_23 {dimension_numbers = #tpu.dot_dimension_numbers<[1], [0], [0], [1], [0, 0, 1, 1], [], []>} : vector<2x128xbf16>, vector<128x512xbf16>, vector<2x512xf32> -> vector<2x512xf32>
    %97 = arith.addf %96, %9 : vector<2x512xf32>
    %98 = vector.extract_strided_slice %6 {offsets = [8, 0], sizes = [2, 512], strides = [1, 1]} : vector<16x512xf32> to vector<2x512xf32>
    %99 = arith.addf %97, %98 : vector<2x512xf32>
    %100 = vector.extract_strided_slice %99 {offsets = [0, 0], sizes = [2, 384], strides = [1, 1]} : vector<2x512xf32> to vector<2x384xf32>
    %101 = arith.negf %100 : vector<2x384xf32>
    %102 = math.exp %101 : vector<2x384xf32>
    %cst_24 = arith.constant 1.000000e+00 : f32
    %103 = vector.broadcast %cst_24 : f32 to vector<2x384xf32>
    %104 = arith.addf %103, %102 : vector<2x384xf32>
    %105 = arith.divf %103, %104 : vector<2x384xf32>
    %106 = vector.extract_strided_slice %99 {offsets = [0, 384], sizes = [2, 128], strides = [1, 1]} : vector<2x512xf32> to vector<2x128xf32>
    %107 = math.tanh %106 : vector<2x128xf32>
    %108 = vector.extract_strided_slice %105 {offsets = [0, 0], sizes = [2, 128], strides = [1, 1]} : vector<2x384xf32> to vector<2x128xf32>
    %109 = vector.extract_strided_slice %105 {offsets = [0, 128], sizes = [2, 128], strides = [1, 1]} : vector<2x384xf32> to vector<2x128xf32>
    %110 = vector.extract_strided_slice %105 {offsets = [0, 256], sizes = [2, 128], strides = [1, 1]} : vector<2x384xf32> to vector<2x128xf32>
    %111 = arith.mulf %109, %91 : vector<2x128xf32>
    %112 = arith.mulf %108, %107 : vector<2x128xf32>
    %113 = arith.addf %111, %112 : vector<2x128xf32>
    %114 = math.tanh %113 : vector<2x128xf32>
    %115 = arith.mulf %110, %114 : vector<2x128xf32>
    %116 = arith.truncf %115 : vector<2x128xf32> to vector<2x128xbf16>
    %c0_25 = arith.constant 0 : index
    %c0_26 = arith.constant 0 : index
    %117 = vector.load %arg3[%c0_25, %c0_26] : memref<128x512xbf16, #tpu.memory_space<vmem>>, vector<128x512xbf16>
    %cst_27 = arith.constant dense<0.000000e+00> : vector<2x512xf32>
    %118 = tpu.matmul %116, %117, %cst_27 {dimension_numbers = #tpu.dot_dimension_numbers<[1], [0], [0], [1], [0, 0, 1, 1], [], []>} : vector<2x128xbf16>, vector<128x512xbf16>, vector<2x512xf32> -> vector<2x512xf32>
    %119 = arith.addf %118, %9 : vector<2x512xf32>
    %120 = vector.extract_strided_slice %6 {offsets = [10, 0], sizes = [2, 512], strides = [1, 1]} : vector<16x512xf32> to vector<2x512xf32>
    %121 = arith.addf %119, %120 : vector<2x512xf32>
    %122 = vector.extract_strided_slice %121 {offsets = [0, 0], sizes = [2, 384], strides = [1, 1]} : vector<2x512xf32> to vector<2x384xf32>
    %123 = arith.negf %122 : vector<2x384xf32>
    %124 = math.exp %123 : vector<2x384xf32>
    %cst_28 = arith.constant 1.000000e+00 : f32
    %125 = vector.broadcast %cst_28 : f32 to vector<2x384xf32>
    %126 = arith.addf %125, %124 : vector<2x384xf32>
    %127 = arith.divf %125, %126 : vector<2x384xf32>
    %128 = vector.extract_strided_slice %121 {offsets = [0, 384], sizes = [2, 128], strides = [1, 1]} : vector<2x512xf32> to vector<2x128xf32>
    %129 = math.tanh %128 : vector<2x128xf32>
    %130 = vector.extract_strided_slice %127 {offsets = [0, 0], sizes = [2, 128], strides = [1, 1]} : vector<2x384xf32> to vector<2x128xf32>
    %131 = vector.extract_strided_slice %127 {offsets = [0, 128], sizes = [2, 128], strides = [1, 1]} : vector<2x384xf32> to vector<2x128xf32>
    %132 = vector.extract_strided_slice %127 {offsets = [0, 256], sizes = [2, 128], strides = [1, 1]} : vector<2x384xf32> to vector<2x128xf32>
    %133 = arith.mulf %131, %113 : vector<2x128xf32>
    %134 = arith.mulf %130, %129 : vector<2x128xf32>
    %135 = arith.addf %133, %134 : vector<2x128xf32>
    %136 = math.tanh %135 : vector<2x128xf32>
    %137 = arith.mulf %132, %136 : vector<2x128xf32>
    %138 = arith.truncf %137 : vector<2x128xf32> to vector<2x128xbf16>
    %c0_29 = arith.constant 0 : index
    %c0_30 = arith.constant 0 : index
    %139 = vector.load %arg3[%c0_29, %c0_30] : memref<128x512xbf16, #tpu.memory_space<vmem>>, vector<128x512xbf16>
    %cst_31 = arith.constant dense<0.000000e+00> : vector<2x512xf32>
    %140 = tpu.matmul %138, %139, %cst_31 {dimension_numbers = #tpu.dot_dimension_numbers<[1], [0], [0], [1], [0, 0, 1, 1], [], []>} : vector<2x128xbf16>, vector<128x512xbf16>, vector<2x512xf32> -> vector<2x512xf32>
    %141 = arith.addf %140, %9 : vector<2x512xf32>
    %142 = vector.extract_strided_slice %6 {offsets = [12, 0], sizes = [2, 512], strides = [1, 1]} : vector<16x512xf32> to vector<2x512xf32>
    %143 = arith.addf %141, %142 : vector<2x512xf32>
    %144 = vector.extract_strided_slice %143 {offsets = [0, 0], sizes = [2, 384], strides = [1, 1]} : vector<2x512xf32> to vector<2x384xf32>
    %145 = arith.negf %144 : vector<2x384xf32>
    %146 = math.exp %145 : vector<2x384xf32>
    %cst_32 = arith.constant 1.000000e+00 : f32
    %147 = vector.broadcast %cst_32 : f32 to vector<2x384xf32>
    %148 = arith.addf %147, %146 : vector<2x384xf32>
    %149 = arith.divf %147, %148 : vector<2x384xf32>
    %150 = vector.extract_strided_slice %143 {offsets = [0, 384], sizes = [2, 128], strides = [1, 1]} : vector<2x512xf32> to vector<2x128xf32>
    %151 = math.tanh %150 : vector<2x128xf32>
    %152 = vector.extract_strided_slice %149 {offsets = [0, 0], sizes = [2, 128], strides = [1, 1]} : vector<2x384xf32> to vector<2x128xf32>
    %153 = vector.extract_strided_slice %149 {offsets = [0, 128], sizes = [2, 128], strides = [1, 1]} : vector<2x384xf32> to vector<2x128xf32>
    %154 = vector.extract_strided_slice %149 {offsets = [0, 256], sizes = [2, 128], strides = [1, 1]} : vector<2x384xf32> to vector<2x128xf32>
    %155 = arith.mulf %153, %135 : vector<2x128xf32>
    %156 = arith.mulf %152, %151 : vector<2x128xf32>
    %157 = arith.addf %155, %156 : vector<2x128xf32>
    %158 = math.tanh %157 : vector<2x128xf32>
    %159 = arith.mulf %154, %158 : vector<2x128xf32>
    %160 = arith.truncf %159 : vector<2x128xf32> to vector<2x128xbf16>
    %c0_33 = arith.constant 0 : index
    %c0_34 = arith.constant 0 : index
    %161 = vector.load %arg3[%c0_33, %c0_34] : memref<128x512xbf16, #tpu.memory_space<vmem>>, vector<128x512xbf16>
    %cst_35 = arith.constant dense<0.000000e+00> : vector<2x512xf32>
    %162 = tpu.matmul %160, %161, %cst_35 {dimension_numbers = #tpu.dot_dimension_numbers<[1], [0], [0], [1], [0, 0, 1, 1], [], []>} : vector<2x128xbf16>, vector<128x512xbf16>, vector<2x512xf32> -> vector<2x512xf32>
    %163 = arith.addf %162, %9 : vector<2x512xf32>
    %164 = vector.extract_strided_slice %6 {offsets = [14, 0], sizes = [2, 512], strides = [1, 1]} : vector<16x512xf32> to vector<2x512xf32>
    %165 = arith.addf %163, %164 : vector<2x512xf32>
    %166 = vector.extract_strided_slice %165 {offsets = [0, 0], sizes = [2, 384], strides = [1, 1]} : vector<2x512xf32> to vector<2x384xf32>
    %167 = arith.negf %166 : vector<2x384xf32>
    %168 = math.exp %167 : vector<2x384xf32>
    %cst_36 = arith.constant 1.000000e+00 : f32
    %169 = vector.broadcast %cst_36 : f32 to vector<2x384xf32>
    %170 = arith.addf %169, %168 : vector<2x384xf32>
    %171 = arith.divf %169, %170 : vector<2x384xf32>
    %172 = vector.extract_strided_slice %165 {offsets = [0, 384], sizes = [2, 128], strides = [1, 1]} : vector<2x512xf32> to vector<2x128xf32>
    %173 = math.tanh %172 : vector<2x128xf32>
    %174 = vector.extract_strided_slice %171 {offsets = [0, 0], sizes = [2, 128], strides = [1, 1]} : vector<2x384xf32> to vector<2x128xf32>
    %175 = vector.extract_strided_slice %171 {offsets = [0, 128], sizes = [2, 128], strides = [1, 1]} : vector<2x384xf32> to vector<2x128xf32>
    %176 = vector.extract_strided_slice %171 {offsets = [0, 256], sizes = [2, 128], strides = [1, 1]} : vector<2x384xf32> to vector<2x128xf32>
    %177 = arith.mulf %175, %157 : vector<2x128xf32>
    %178 = arith.mulf %174, %173 : vector<2x128xf32>
    %179 = arith.addf %177, %178 : vector<2x128xf32>
    %180 = math.tanh %179 : vector<2x128xf32>
    %181 = arith.mulf %176, %180 : vector<2x128xf32>
    %182 = arith.truncf %181 : vector<2x128xf32> to vector<2x128xbf16>
    %c0_37 = arith.constant 0 : index
    %c0_38 = arith.constant 0 : index
    %183 = vector.load %arg3[%c0_37, %c0_38] : memref<128x512xbf16, #tpu.memory_space<vmem>>, vector<128x512xbf16>
    %cst_39 = arith.constant dense<0.000000e+00> : vector<2x512xf32>
    %184 = tpu.matmul %182, %183, %cst_39 {dimension_numbers = #tpu.dot_dimension_numbers<[1], [0], [0], [1], [0, 0, 1, 1], [], []>} : vector<2x128xbf16>, vector<128x512xbf16>, vector<2x512xf32> -> vector<2x512xf32>
    %185 = arith.addf %184, %9 : vector<2x512xf32>
    %186 = vector.extract_strided_slice %185 {offsets = [0, 0], sizes = [2, 384], strides = [1, 1]} : vector<2x512xf32> to vector<2x384xf32>
    %187 = arith.negf %186 : vector<2x384xf32>
    %188 = math.exp %187 : vector<2x384xf32>
    %cst_40 = arith.constant 1.000000e+00 : f32
    %189 = vector.broadcast %cst_40 : f32 to vector<2x384xf32>
    %190 = arith.addf %189, %188 : vector<2x384xf32>
    %191 = arith.divf %189, %190 : vector<2x384xf32>
    %192 = vector.extract_strided_slice %185 {offsets = [0, 384], sizes = [2, 128], strides = [1, 1]} : vector<2x512xf32> to vector<2x128xf32>
    %193 = math.tanh %192 : vector<2x128xf32>
    %194 = vector.extract_strided_slice %191 {offsets = [0, 0], sizes = [2, 128], strides = [1, 1]} : vector<2x384xf32> to vector<2x128xf32>
    %195 = vector.extract_strided_slice %191 {offsets = [0, 128], sizes = [2, 128], strides = [1, 1]} : vector<2x384xf32> to vector<2x128xf32>
    %196 = vector.extract_strided_slice %191 {offsets = [0, 256], sizes = [2, 128], strides = [1, 1]} : vector<2x384xf32> to vector<2x128xf32>
    %197 = arith.mulf %195, %179 : vector<2x128xf32>
    %198 = arith.mulf %194, %193 : vector<2x128xf32>
    %199 = arith.addf %197, %198 : vector<2x128xf32>
    %200 = math.tanh %199 : vector<2x128xf32>
    %201 = arith.mulf %196, %200 : vector<2x128xf32>
    %202 = vector.extract_strided_slice %201 {offsets = [0, 64], sizes = [2, 64], strides = [1, 1]} : vector<2x128xf32> to vector<2x64xf32>
    %c0_41 = arith.constant 0 : index
    %c0_42 = arith.constant 0 : index
    %203 = vector.load %arg5[%c0_41, %c0_42] : memref<1x64xf32, #tpu.memory_space<vmem>>, vector<1x64xf32>
    %204 = vector.broadcast %203 : vector<1x64xf32> to vector<2x64xf32>
    %205 = arith.mulf %202, %204 : vector<2x64xf32>
    %cst_43 = arith.constant dense<0.000000e+00> : vector<2xf32>
    %206 = vector.multi_reduction <add>, %205, %cst_43 [1] : vector<2x64xf32> to vector<2xf32>
    %207 = vector.shape_cast %206 : vector<2xf32> to vector<2x1xf32>
    %c0_44 = arith.constant 0 : index
    %c0_45 = arith.constant 0 : index
    %208 = vector.load %arg6[%c0_44, %c0_45] : memref<1x1xf32, #tpu.memory_space<vmem>>, vector<1x1xf32>
    %209 = vector.broadcast %208 : vector<1x1xf32> to vector<2x1xf32>
    %210 = arith.addf %207, %209 : vector<2x1xf32>
    %211 = arith.negf %210 : vector<2x1xf32>
    %212 = math.exp %211 : vector<2x1xf32>
    %cst_46 = arith.constant 1.000000e+00 : f32
    %213 = vector.broadcast %cst_46 : f32 to vector<2x1xf32>
    %214 = arith.addf %213, %212 : vector<2x1xf32>
    %215 = arith.divf %213, %214 : vector<2x1xf32>
    %c0_47 = arith.constant 0 : index
    %c0_48 = arith.constant 0 : index
    %216 = vector.load %arg7[%c0_47, %c0_48] : memref<2x1xf32, #tpu.memory_space<vmem>>, vector<2x1xf32>
    tpu.vector_store %arg7[%c0_47, %c0_48], %215 {strides = array<i32>} : memref<2x1xf32, #tpu.memory_space<vmem>>, vector<2x1xf32>,
    return
  }
}

</mosaic_0001>

<bundles_post_ra>
// kernel: tpu_custom_call.1
= control target key start
LH: loop header
LB: loop body
LE: loop exit
PB: predicated region body
PF: predicated region fallthrough
CT: control target
= control target key end

     0   :  { %s2555_s0 = inlined_call_operand.hbm [shape: f32[16,10], index: 0, kind: input, shape index: {}]   ;;  %s2556_s1 = inlined_call_operand.hbm [shape: bf16[10,512], index: 1, kind: input, shape index: {}]   ;;  %s2557_s2 = inlined_call_operand.hbm [shape: f32[1,512], index: 2, kind: input, shape index: {}]   ;;  %s2558_s3 = inlined_call_operand.hbm [shape: bf16[128,512], index: 3, kind: input, shape index: {}]   ;;  %s2559_s4 = inlined_call_operand.vmem [shape: f32[1,512], index: 4, kind: input, shape index: {}]   ;;  %s2560_s5 = inlined_call_operand.vmem [shape: f32[1,64], index: 5, kind: input, shape index: {}]   ;;  %s2561_s6 = inlined_call_operand.<no memory space> [shape: f32[1,1], index: 6, kind: input, shape index: {}]   ;;  %s2562_s7 = inlined_call_operand.vmem [shape: f32[2,1], index: 7, kind: output, shape index: {}]  }
   0x1   :  { %v12_v0 = vstv %s2561_s6 }
   0x2   :  { %13 = vst [vmem:[#allocation2] sm:$0x1] %v12_v0 }
   0x3   :  { %14 = vsyncpa [#allocation4], 0 }
   0x4   :  { %15 = vsyncpa [#allocation6], 0  ;;  %s34_s28 = sshll.u32 %s2556_s1, 4  ;;  %s35_s28 = int_to_ptr.hbm [resolvable:$true] %s34_s28 }
   0x5   :  { %16 = vsyncpa [#allocation9], 0  ;;  %s1994_s29 = smov [#allocation5]   ;;  %s21_s10 = sshll.u32 %s2555_s0, 4  ;;  %s22_s10 = int_to_ptr.hbm [resolvable:$true] %s21_s10 }
   0x6   :  { %s36_s30 = sshll.u32 %s1994_s29, 4  ;;  %s1995_s11 = smov 256   ;;  %s37_s30 = int_to_ptr.vmem [resolvable:$true] %s36_s30 }
   0x7   :  { %s1996_s12 = smov 16   ;;  %s1997_s6 = smov [#allocation3]  }
   0x8   :  { %42 = dma.hbm_to_vmem [thread:$0]  %s35_s28, 512, %s37_s30, [#allocation6], %s1995_s11, %s1995_s11, %s1996_s12  }
   0x9   :  { %s23_s13 = sshll.u32 %s1997_s6, 4  ;;  %s1998_s14 = smov 128   ;;  %s24_s13 = int_to_ptr.vmem [resolvable:$true] %s23_s13 }
   0xa   :  { %s1999_s15 = smov 8   ;;  %s48_s17 = sshll.u32 %s2557_s2, 4  ;;  %s49_s17 = int_to_ptr.hbm [resolvable:$true] %s48_s17 }
   0xb   :  { %29 = dma.hbm_to_vmem [thread:$0]  %s22_s10, 256, %s24_s13, [#allocation4], %s1998_s14, %s1998_s14, %s1999_s15  }
   0xc   :  { %s2000_s18 = smov [#allocation7]   ;;  %s58_s21 = sshll.u32 %s2558_s3, 4  ;;  %s59_s21 = int_to_ptr.hbm [resolvable:$true] %s58_s21 }
   0xd   :  { %s50_s19 = sshll.u32 %s2000_s18, 4  ;;  %s2001_s22 = smov [#allocation8]   ;;  %s51_s19 = int_to_ptr.vmem [resolvable:$true] %s50_s19 }
   0xe   :  { %53 = dma.hbm_to_vmem [thread:$0]  %s49_s17, 64, %s51_s19, [#allocation6]  }
   0xf   :  { %s60_s23 = sshll.u32 %s2001_s22, 4  ;;  %s61_s23 = int_to_ptr.vmem [resolvable:$true] %s60_s23 }
  0x10   :  { %66 = dma.hbm_to_vmem [thread:$0]  %s59_s21, 4096, %s61_s23, [#allocation9], %s1995_s11, %s1995_s11, %s1996_s12  }
  0x11   :  { %1988 = dma.done.wait [#allocation4], 256  }
  0x12   :  { %1989 = vsyncadd [#allocation4], 4294967040 }
  0x13   :  { %1990 = dma.done.wait [#allocation6], 576  }
  0x14   :  { %1991 = vsyncadd [#allocation6], 4294966720 }
  0x15   :  { %1992 = dma.done.wait [#allocation9], 4096  }
  0x16   :  { %1993 = vsyncadd [#allocation9], 4294963200  ;;  %vm127_vm0 = vcmask 1044480   ;;  %v1523_v1 = vld [vmem:[#allocation5] sm:$0xf]  ;;  %v90_v10 = vld [vmem:[#allocation3] sm:$0xff] }
  0x17   :  { %v1699_v2 = vld [vmem:[#allocation5 + $0xc] sm:$0x10]  ;;  %v1697_v3 = vld [vmem:[#allocation5 + $0x4] sm:$0xf]  ;;  %v1525_v5 = vld [vmem:[#allocation5 + $0x10] sm:$0x10] }
  0x18   :  { %v1524_v4 = vor.u32 %v1699_v2, %v1523_v1  ;;  %v1531_v6 = vld [vmem:[#allocation5 + $0x8] sm:$0xf]  ;;  %v1700_v7 = vld [vmem:[#allocation5 + $0x14] sm:$0x10]  ;;  %v1528_v8 = vor.u32 %v1697_v3, %v1525_v5  ;;  %v1698_v12 = vld [vmem:[#allocation5 + $0xc] sm:$0xf] }
  0x19   :  { %v1532_v9 = vor.u32 %v1700_v7, %v1531_v6  ;;  %v91_v11 = vld [vmem:[#allocation3 + $0x8] sm:$0xff]  ;;  %vm123_vm1 = vcmask 80896   ;;  %v1658_v20 = vld [vmem:[#allocation8 + $0xe0] sm:$0xf]  ;;  %v1731_v21 = vld [vmem:[#allocation8 + $0xec] sm:$0xf0] }
  0x1a   :  { %v129_v13 = vsel %vm127_vm0, %v1524_v4, 0  ;;  %v92_v14 = vpack.c.bf16 %v91_v11, %v90_v10  ;;  %v1533_v15 = vld [vmem:[#allocation5 + $0x18] sm:$0x10]  ;;  %v132_v16 = vsel %vm127_vm0, %v1528_v8, 0  ;;  %v1729_v22 = vld [vmem:[#allocation8 + $0xe4] sm:$0xf]  ;;  %v2062_v23 = vor.u32 %v1731_v21, %v1658_v20 }
  0x1b   :  { %147 = vmatpush.bf16.msra.mxu0 %v129_v13  ;;  %v135_v17 = vsel %vm127_vm0, %v1532_v9, 0  ;;  %v1536_v18 = vor.u32 %v1698_v12, %v1533_v15  ;;  %161 = vmatpush.bf16.msra.mxu1 %v132_v16  ;;  %v1660_v24 = vld [vmem:[#allocation8 + $0xf0] sm:$0xf0]  ;;  %v1666_v25 = vld [vmem:[#allocation8 + $0xe8] sm:$0xf]  ;;  %s2002_s25 = smov 64  }
  0x1c   :  { %175 = vmatpush.bf16.msra.mxu2 %v135_v17  ;;  %v1732_v26 = vld [vmem:[#allocation8 + $0xf4] sm:$0xf0]  ;;  %v2064_v27 = vor.u32 %v1729_v22, %v1660_v24  ;;  %v1730_v29 = vld [vmem:[#allocation8 + $0xec] sm:$0xf]  ;;  %v1668_v30 = vld [vmem:[#allocation8 + $0xf8] sm:$0xf0] }
  0x1d   :  { %v138_v19 = vsel %vm127_vm0, %v1536_v18, 0  ;;  %v2066_v28 = vor.u32 %v1732_v26, %v1666_v25  ;;  %v2069_v31 = vor.u32 %v1730_v29, %v1668_v30  ;;  %v1642_v32 = vld [vmem:[#allocation8 + $0xc0] sm:$0xf]  ;;  %v1727_v33 = vld [vmem:[#allocation8 + $0xcc] sm:$0xf0] }
  0x1e   :  { %1537 = vmatmul.msk.bf16.vlgmr.msra.gmra.mxu0 %vm123_vm1, %v92_v14  ;;  %189 = vmatpush.bf16.msra.mxu3 %v138_v19  ;;  %v1725_v34 = vld [vmem:[#allocation8 + $0xc4] sm:$0xf]  ;;  %v2074_v35 = vor.u32 %v1727_v33, %v1642_v32  ;;  %v1644_v36 = vld [vmem:[#allocation8 + $0xd0] sm:$0xf0]  ;;  %v1650_v37 = vld [vmem:[#allocation8 + $0xc8] sm:$0xf] }
  0x1f   :  { %1538 = vmatmul.msk.bf16.vlgmr.msra.gmra.mxu1 %vm123_vm1, %v92_v14  ;;  %1539 = vmatmul.msk.bf16.vlgmr.msra.gmra.mxu2 %vm123_vm1, %v92_v14  ;;  %v1728_v38 = vld [vmem:[#allocation8 + $0xd4] sm:$0xf0]  ;;  %v2076_v39 = vor.u32 %v1725_v34, %v1644_v36  ;;  %v1726_v41 = vld [vmem:[#allocation8 + $0xcc] sm:$0xf]  ;;  %v1652_v42 = vld [vmem:[#allocation8 + $0xd8] sm:$0xf0] }
  0x20   :  { %462 = vmatpush.bf16.msrb.mxu0 %v2062_v23  ;;  %475 = vmatpush.bf16.msrb.mxu1 %v2064_v27  ;;  %v2078_v40 = vor.u32 %v1728_v38, %v1650_v37  ;;  %v2081_v43 = vor.u32 %v1726_v41, %v1652_v42  ;;  %v1626_v44 = vld [vmem:[#allocation8 + $0xa0] sm:$0xf]  ;;  %v1723_v45 = vld [vmem:[#allocation8 + $0xac] sm:$0xf0]  ;;  %v1721_v47 = vld [vmem:[#allocation8 + $0xa4] sm:$0xf] }
  0x21   :  { %1540 = vmatmul.msk.bf16.vlgmr.msra.gmra.mxu3 %vm123_vm1, %v92_v14  ;;  %488 = vmatpush.bf16.msrb.mxu2 %v2066_v28  ;;  %v2086_v46 = vor.u32 %v1723_v45, %v1626_v44  ;;  %v1628_v48 = vld [vmem:[#allocation8 + $0xb0] sm:$0xf0]  ;;  %v1634_v49 = vld [vmem:[#allocation8 + $0xa8] sm:$0xf]  ;;  %v1724_v51 = vld [vmem:[#allocation8 + $0xb4] sm:$0xf0] }
  0x22   :  { %501 = vmatpush.bf16.msrb.mxu3 %v2069_v31  ;;  %v2088_v50 = vor.u32 %v1721_v47, %v1628_v48  ;;  %v1722_v52 = vld [vmem:[#allocation8 + $0xac] sm:$0xf]  ;;  %v1636_v53 = vld [vmem:[#allocation8 + $0xb8] sm:$0xf0]  ;;  %v2093_v55 = vor.u32 %v1724_v51, %v1634_v49  ;;  %v1610_v57 = vld [vmem:[#allocation8 + $0x80] sm:$0xf] }
  0x23   :  { %v2090_v54 = vld [vmem:[#allocation7] sm:$0xf]  ;;  %v2095_v56 = vor.u32 %v1722_v52, %v1636_v53  ;;  %v1719_v58 = vld [vmem:[#allocation8 + $0x8c] sm:$0xf0]  ;;  %v1717_v59 = vld [vmem:[#allocation8 + $0x84] sm:$0xf] }
  0x24   :  { %463 = vmatpush.bf16.msrb.mxu0 %v2074_v35  ;;  %476 = vmatpush.bf16.msrb.mxu1 %v2076_v39  ;;  %2576 = vst [vmem:[#allocation13_spill] sm:$0xff] %v2090_v54  ;;  %v2100_v60 = vor.u32 %v1719_v58, %v1610_v57  ;;  %v1612_v61 = vld [vmem:[#allocation8 + $0x90] sm:$0xf0]  ;;  %v1618_v62 = vld [vmem:[#allocation8 + $0x88] sm:$0xf]  ;;  %v2566_v4 = vperm.slane %v2090_v54, 0 }
  0x25   :  { %489 = vmatpush.bf16.msrb.mxu2 %v2078_v40  ;;  %v1720_v63 = vld [vmem:[#allocation8 + $0x94] sm:$0xf0]  ;;  %v2102_v0 = vor.u32 %v1717_v59, %v1612_v61  ;;  %v1718_v2 = vld [vmem:[#allocation8 + $0x8c] sm:$0xf]  ;;  %v1620_v3 = vld [vmem:[#allocation8 + $0x98] sm:$0xf0] }
  0x26   :  { %502 = vmatpush.bf16.msrb.mxu3 %v2081_v43  ;;  %v2104_v1 = vor.u32 %v1720_v63, %v1618_v62  ;;  %v2565_v5 = vperm.slane %v2090_v54, 1  ;;  %v2564_v6 = vperm.slane %v2090_v54, 2  ;;  %v2110_v7 = vor.u32 %v1718_v2, %v1620_v3  ;;  %v1594_v8 = vld [vmem:[#allocation8 + $0x60] sm:$0xf]  ;;  %v1715_v9 = vld [vmem:[#allocation8 + $0x6c] sm:$0xf0] }
  0x27   :  { %v1713_v10 = vld [vmem:[#allocation8 + $0x64] sm:$0xf]  ;;  %v2115_v11 = vor.u32 %v1715_v9, %v1594_v8  ;;  %v1596_v12 = vld [vmem:[#allocation8 + $0x70] sm:$0xf0]  ;;  %v1602_v13 = vld [vmem:[#allocation8 + $0x68] sm:$0xf] }
  0x28   :  { %464 = vmatpush.bf16.msrb.mxu0 %v2086_v46  ;;  %477 = vmatpush.bf16.msrb.mxu1 %v2088_v50  ;;  %v1716_v14 = vld [vmem:[#allocation8 + $0x74] sm:$0xf0]  ;;  %v2117_v15 = vor.u32 %v1713_v10, %v1596_v12  ;;  %v1714_v17 = vld [vmem:[#allocation8 + $0x6c] sm:$0xf]  ;;  %v1604_v18 = vld [vmem:[#allocation8 + $0x78] sm:$0xf0] }
  0x29   :  { %490 = vmatpush.bf16.msrb.mxu2 %v2093_v55  ;;  %v2119_v16 = vor.u32 %v1716_v14, %v1602_v13  ;;  %v1578_v19 = vld [vmem:[#allocation8 + $0x40] sm:$0xf]  ;;  %v2122_v21 = vor.u32 %v1714_v17, %v1604_v18  ;;  %v1711_v22 = vld [vmem:[#allocation8 + $0x4c] sm:$0xf0]  ;;  %v1709_v24 = vld [vmem:[#allocation8 + $0x44] sm:$0xf] }
  0x2a   :  { %503 = vmatpush.bf16.msrb.mxu3 %v2095_v56  ;;  %v1580_v25 = vld [vmem:[#allocation8 + $0x50] sm:$0xf0]  ;;  %v2129_v30 = vor.u32 %v1711_v22, %v1578_v19  ;;  %v1586_v33 = vld [vmem:[#allocation8 + $0x48] sm:$0xf]  ;;  %v1712_v34 = vld [vmem:[#allocation8 + $0x54] sm:$0xf0] }
  0x2b   :  { %v2131_v32 = vor.u32 %v1709_v24, %v1580_v25  ;;  %v1710_v36 = vld [vmem:[#allocation8 + $0x4c] sm:$0xf]  ;;  %v2139_v38 = vor.u32 %v1712_v34, %v1586_v33  ;;  %v1588_v41 = vld [vmem:[#allocation8 + $0x58] sm:$0xf0]  ;;  %v1562_v42 = vld [vmem:[#allocation8 + $0x20] sm:$0xf] }
  0x2c   :  { %465 = vmatpush.bf16.msrb.mxu0 %v2100_v60  ;;  %478 = vmatpush.bf16.msrb.mxu1 %v2102_v0  ;;  %v1707_v44 = vld [vmem:[#allocation8 + $0x2c] sm:$0xf0]  ;;  %v2142_v47 = vor.u32 %v1710_v36, %v1588_v41  ;;  %v1705_v48 = vld [vmem:[#allocation8 + $0x24] sm:$0xf]  ;;  %v1564_v49 = vld [vmem:[#allocation8 + $0x30] sm:$0xf0] }
  0x2d   :  { %491 = vmatpush.bf16.msrb.mxu2 %v2104_v1  ;;  %v2146_v52 = vor.u32 %v1707_v44, %v1562_v42  ;;  %v1570_v53 = vld [vmem:[#allocation8 + $0x28] sm:$0xf]  ;;  %v1708_v57 = vld [vmem:[#allocation8 + $0x34] sm:$0xf0]  ;;  %v2149_v58 = vor.u32 %v1705_v48, %v1564_v49  ;;  %v1706_v59 = vld [vmem:[#allocation8 + $0x2c] sm:$0xf] }
  0x2e   :  { %504 = vmatpush.bf16.msrb.mxu3 %v2110_v7  ;;  %v1572_v61 = vld [vmem:[#allocation8 + $0x38] sm:$0xf0]  ;;  %v1546_v62 = vld [vmem:[#allocation8] sm:$0xf]  ;;  %v2153_v63 = vor.u32 %v1708_v57, %v1570_v53  ;;  %v1703_v3 = vld [vmem:[#allocation8 + $0xc] sm:$0xf0] }
  0x2f   :  { %v2155_v2 = vor.u32 %v1706_v59, %v1572_v61  ;;  %v1701_v8 = vld [vmem:[#allocation8 + $0x4] sm:$0xf]  ;;  %v1548_v9 = vld [vmem:[#allocation8 + $0x10] sm:$0xf0]  ;;  %v1554_v12 = vld [vmem:[#allocation8 + $0x8] sm:$0xf]  ;;  %v2162_v18 = vor.u32 %v1703_v3, %v1546_v62 }
  0x30   :  { %466 = vmatpush.bf16.msrb.mxu0 %v2115_v11  ;;  %479 = vmatpush.bf16.msrb.mxu1 %v2117_v15  ;;  %v1704_v13 = vld [vmem:[#allocation8 + $0x14] sm:$0xf0]  ;;  %v1702_v14 = vld [vmem:[#allocation8 + $0xc] sm:$0xf]  ;;  %v1556_v19 = vld [vmem:[#allocation8 + $0x18] sm:$0xf0] }
  0x31   :  { %492 = vmatpush.bf16.msrb.mxu2 %v2119_v16  ;;  %v2170_v24 = vor.u32 %v1704_v13, %v1554_v12  ;;  %v2172_v25 = vor.u32 %v1702_v14, %v1556_v19  ;;  %v2563_v41 = vperm.slane %v2090_v54, 3 }
  0x32   :  { %505 = vmatpush.bf16.msrb.mxu3 %v2122_v21 }
  0x34   :  { %467 = vmatpush.bf16.msrb.mxu0 %v2129_v30  ;;  %480 = vmatpush.bf16.msrb.mxu1 %v2131_v32 }
  0x35   :  { %493 = vmatpush.bf16.msrb.mxu2 %v2139_v38 }
  0x36   :  { %506 = vmatpush.bf16.msrb.mxu3 %v2142_v47 }
  0x38   :  { %468 = vmatpush.bf16.msrb.mxu0 %v2146_v52  ;;  %481 = vmatpush.bf16.msrb.mxu1 %v2149_v58 }
  0x39   :  { %494 = vmatpush.bf16.msrb.mxu2 %v2153_v63 }
  0x3a   :  { %507 = vmatpush.bf16.msrb.mxu3 %v2155_v2 }
  0x3c   :  { %469 = vmatpush.bf16.msrb.mxu0 %v2162_v18 }
  0x3d   :  { %495 = vmatpush.bf16.msrb.mxu2 %v2170_v24 }
  0x3e   :  { %508 = vmatpush.bf16.msrb.mxu3 %v2172_v25 }
  0x40   :  { %594 = vmatpush.bf16.msra.mxu0 %v2062_v23 }
  0x41   :  { %620 = vmatpush.bf16.msra.mxu2 %v2066_v28 }
  0x42   :  { %633 = vmatpush.bf16.msra.mxu3 %v2069_v31 }
  0x44   :  { %595 = vmatpush.bf16.msra.mxu0 %v2074_v35 }
  0x45   :  { %621 = vmatpush.bf16.msra.mxu2 %v2078_v40 }
  0x46   :  { %634 = vmatpush.bf16.msra.mxu3 %v2081_v43 }
  0x48   :  { %596 = vmatpush.bf16.msra.mxu0 %v2086_v46 }
  0x49   :  { %622 = vmatpush.bf16.msra.mxu2 %v2093_v55 }
  0x4a   :  { %635 = vmatpush.bf16.msra.mxu3 %v2095_v56 }
  0x4c   :  { %597 = vmatpush.bf16.msra.mxu0 %v2100_v60 }
  0x4d   :  { %623 = vmatpush.bf16.msra.mxu2 %v2104_v1 }
  0x4e   :  { %636 = vmatpush.bf16.msra.mxu3 %v2110_v7 }
  0x50   :  { %598 = vmatpush.bf16.msra.mxu0 %v2115_v11 }
  0x51   :  { %624 = vmatpush.bf16.msra.mxu2 %v2119_v16 }
  0x52   :  { %637 = vmatpush.bf16.msra.mxu3 %v2122_v21 }
  0x54   :  { %599 = vmatpush.bf16.msra.mxu0 %v2129_v30 }
  0x55   :  { %625 = vmatpush.bf16.msra.mxu2 %v2139_v38 }
  0x56   :  { %638 = vmatpush.bf16.msra.mxu3 %v2142_v47 }
  0x58   :  { %600 = vmatpush.bf16.msra.mxu0 %v2146_v52 }
  0x59   :  { %626 = vmatpush.bf16.msra.mxu2 %v2153_v63 }
  0x5a   :  { %639 = vmatpush.bf16.msra.mxu3 %v2155_v2 }
  0x5c   :  { %601 = vmatpush.bf16.msra.mxu0 %v2162_v18 }
  0x5d   :  { %627 = vmatpush.bf16.msra.mxu2 %v2170_v24 }
  0x5e   :  { %640 = vmatpush.bf16.msra.mxu3 %v2172_v25 }
  0x9b   :  { %v149_v20 = vpop.f32.mrf.mxu0 }
  0x9c   :  { %v2126_v26 = vadd.f32 %v149_v20, %v2566_v4  ;;  %v163_v29 = vpop.f32.mrf.mxu1  ;;  %v2165_v20 = vor.u32 %v1701_v8, %v1548_v9 }
  0x9d   :  { %v2135_v37 = vadd.f32 %v163_v29, %v2565_v5 }
  0x9e   :  { %v1541_v45 = vmul.f32 -1.442695, %v2126_v26  ;;  %482 = vmatpush.bf16.msrb.mxu1 %v2165_v20 }
  0x9f   :  { %v1542_v51 = vmul.f32 -1.442695, %v2135_v37 }
  0xa0   :  { %1744 = vpow2.f32 %v1541_v45 }
  0xa1   :  { %1746 = vpow2.f32 %v1542_v51 }
  0xa2   :  { %v177_v10 = vpop.f32.mrf.mxu2  ;;  %607 = vmatpush.bf16.msra.mxu1 %v2064_v27 }
  0xa3   :  { %v2159_v17 = vadd.f32 %v177_v10, %v2564_v6 }
  0xa4   :  { %v191_v42 = vpop.f32.mrf.mxu3 }
  0xa5   :  { %v1543_v22 = vmul.f32 -1.442695, %v2159_v17  ;;  %v2186_v45 = vadd.f32 %v191_v42, %v2563_v41 }
  0xa6   :  { %v1745_v29 = vpop.eup %1744  ;;  %608 = vmatpush.bf16.msra.mxu1 %v2076_v39 }
  0xa7   :  { %v1747_v33 = vpop.eup %1746  ;;  %v215_v34 = vadd.f32 1.0, %v1745_v29  ;;  %1748 = vpow2.f32 %v1543_v22  ;;  %2577 = vst [vmem:[#allocation14_spill] sm:$0xff] %v2186_v45 }
  0xa8   :  { %v216_v36 = vadd.f32 1.0, %v1747_v33 }
  0xa9   :  { %1750 = vrcp.f32 %v215_v34  ;;  %v229_v62 = vand.u32 2147483648, %v215_v34  ;;  %v227_v9 = vand.u32 2147483647, %v215_v34  ;;  %vm223_vm4 = vweird.f32 %v215_v34 }
  0xaa   :  { %1752 = vrcp.f32 %v216_v36  ;;  %609 = vmatpush.bf16.msra.mxu1 %v2088_v50  ;;  %v244_v3 = vand.u32 2147483648, %v216_v36  ;;  %v242_v12 = vand.u32 2147483647, %v216_v36  ;;  %vm238_vm5 = vweird.f32 %v216_v36 }
  0xab   :  { %v230_v22 = vor.u32 1.1754944e-38, %v229_v62  ;;  %vm228_vm7 = vcmp.eq.f32.partialorder %v227_v9, 8.507059e+37 }
  0xac   :  { %vm243_vm9 = vcmp.eq.f32.partialorder %v242_v12, 8.507059e+37 }
  0xad   :  { %v1749_v44 = vpop.eup %1748 }
  0xae   :  { %v2188_v48 = vadd.f32 1.0, %v1749_v44  ;;  %610 = vmatpush.bf16.msra.mxu1 %v2102_v0  ;;  %v245_v44 = vor.u32 1.1754944e-38, %v244_v3 }
  0xaf   :  { %v1751_v49 = vpop.eup %1750 }
  0xb0   :  { %v1753_v51 = vpop.eup %1752  ;;  %v219_v53 = vmul.f32 %v1751_v49, %v215_v34  ;;  %1754 = vrcp.f32 %v2188_v48  ;;  %vm224_vm2 = vweird.f32 %v1751_v49  ;;  %vm253_vm11 = vweird.f32 %v2188_v48 }
  0xb1   :  { %v234_v57 = vmul.f32 %v1753_v51, %v216_v36  ;;  %1756 = vtanh.f32 %v2186_v45  ;;  %vm239_vm3 = vweird.f32 %v1753_v51  ;;  %vm225_vm6 = vmor %vm223_vm4, %vm224_vm2 }
  0xb2   :  { %v220_v59 = vsub.f32 1.0, %v219_v53  ;;  %vm240_vm8 = vmor %vm238_vm5, %vm239_vm3  ;;  %611 = vmatpush.bf16.msra.mxu1 %v2117_v15 }
  0xb3   :  { %v235_v61 = vsub.f32 1.0, %v234_v57 }
  0xb4   :  { %v221_v8 = vmul.f32 %v1751_v49, %v220_v59 }
  0xb5   :  { %v236_v10 = vmul.f32 %v1753_v51, %v235_v61 }
  0xb6   :  { %v1755_v13 = vpop.eup %1754  ;;  %v222_v14 = vadd.f32 %v1751_v49, %v221_v8  ;;  %612 = vmatpush.bf16.msra.mxu1 %v2131_v32  ;;  %v257_v8 = vand.u32 2147483647, %v2188_v48 }
  0xb7   :  { %v1757_v19 = vpop.eup %1756  ;;  %v237_v29 = vadd.f32 %v1753_v51, %v236_v10  ;;  %v249_v33 = vmul.f32 %v1755_v13, %v2188_v48  ;;  %vm254_vm10 = vweird.f32 %v1755_v13 }
  0xb8   :  { %v226_v42 = vsel %vm225_vm6, %v1751_v49, %v222_v14  ;;  %vm255_vm12 = vmor %vm253_vm11, %vm254_vm10  ;;  %vm258_vm13 = vcmp.eq.f32.partialorder %v257_v8, 8.507059e+37 }
  0xb9   :  { %v231_v34 = vsel %vm228_vm7, %v230_v22, %v226_v42  ;;  %v241_v53 = vsel %vm240_vm8, %v1753_v51, %v237_v29  ;;  %v250_v57 = vsub.f32 1.0, %v249_v33  ;;  %v259_v51 = vand.u32 2147483648, %v2188_v48  ;;  %v2261_v22 = vpop.f32.mrf.mxu1  ;;  %v196_v29 = vld [vmem:[%s2559_s4] sm:$0xf] }
  0xba   :  { %v265_v59 = vmul.f32 %v1757_v19, %v231_v34  ;;  %v246_v36 = vsel %vm243_vm9, %v245_v44, %v241_v53  ;;  %613 = vmatpush.bf16.msra.mxu1 %v2149_v58  ;;  %2579 = vst [vmem:[#allocation16_spill] sm:$0xff] %v2261_v22  ;;  %v2266_v33 = vperm.slane %v196_v29, 0  ;;  %v2268_v42 = vperm.slane %v196_v29, 1  ;;  %v2270_v44 = vpop.f32.mrf.mxu2  ;;  %v2272_v34 = vpop.f32.mrf.mxu3 }
  0xbb   :  { %v251_v61 = vmul.f32 %v1755_v13, %v250_v57  ;;  %v264_v62 = vmul.f32 0.0, %v246_v36  ;;  %v260_v10 = vor.u32 1.1754944e-38, %v259_v51  ;;  %2580 = vst [vmem:[#allocation17_spill] sm:$0xff] %v2270_v44  ;;  %v518_v36 = vrot.slane %v2126_v26, 2 }
  0xbc   :  { %2581 = vst [vmem:[#allocation18_spill] sm:$0xff] %v2272_v34  ;;  %v2278_v8 = vperm.slane %v196_v29, 2 }
  0xbd   :  { %v2210_v49 = vadd.f32 %v265_v59, %v264_v62  ;;  %v252_v3 = vadd.f32 %v1755_v13, %v251_v61  ;;  %v519_v62 = vrot.slane %v2135_v37, 2 }
  0xbe   :  { %614 = vmatpush.bf16.msra.mxu1 %v2165_v20 }
  0xbf   :  { %1758 = vtanh.f32 %v2210_v49  ;;  %v256_v9 = vsel %vm255_vm12, %v1755_v13, %v252_v3  ;;  %v2259_v13 = vpop.f32.mrf.mxu0 }
  0xc0   :  { %v261_v14 = vsel %vm258_vm13, %v260_v10, %v256_v9  ;;  %2578 = vst [vmem:[#allocation15_spill] sm:$0xff] %v2259_v13 }
  0xc5   :  { %v1759_v12 = vpop.eup %1758 }
  0xc6   :  { %v268_v19 = vmul.f32 %v1759_v12, %v261_v14 }
  0xc8   :  { %v269_v48 = vpack.c.bf16 %v268_v19, %v268_v19 }
  0xca   :  { %470 = vmatmul.bf16.vlgmr.msrb.gmra.mxu0 %v269_v48  ;;  %483 = vmatmul.bf16.vlgmr.msrb.gmra.mxu1 %v269_v48 }
  0xcb   :  { %496 = vmatmul.bf16.vlgmr.msrb.gmra.mxu2 %v269_v48  ;;  %509 = vmatmul.bf16.vlgmr.msrb.gmra.mxu3 %v269_v48  ;;  %v520_v48 = vrot.slane %v2159_v17, 2 }
  0xcc   :  { %722 = vmatpush.bf16.msrb.mxu0 %v2062_v23  ;;  %735 = vmatpush.bf16.msrb.mxu1 %v2064_v27 }
  0xcd   :  { %748 = vmatpush.bf16.msrb.mxu2 %v2066_v28  ;;  %761 = vmatpush.bf16.msrb.mxu3 %v2069_v31 }
  0xd0   :  { %723 = vmatpush.bf16.msrb.mxu0 %v2074_v35  ;;  %736 = vmatpush.bf16.msrb.mxu1 %v2076_v39 }
  0xd1   :  { %749 = vmatpush.bf16.msrb.mxu2 %v2078_v40  ;;  %762 = vmatpush.bf16.msrb.mxu3 %v2081_v43 }
  0xd4   :  { %724 = vmatpush.bf16.msrb.mxu0 %v2086_v46  ;;  %737 = vmatpush.bf16.msrb.mxu1 %v2088_v50 }
  0xd5   :  { %750 = vmatpush.bf16.msrb.mxu2 %v2093_v55  ;;  %763 = vmatpush.bf16.msrb.mxu3 %v2095_v56 }
  0xd8   :  { %725 = vmatpush.bf16.msrb.mxu0 %v2100_v60  ;;  %738 = vmatpush.bf16.msrb.mxu1 %v2102_v0 }
  0xd9   :  { %751 = vmatpush.bf16.msrb.mxu2 %v2104_v1  ;;  %764 = vmatpush.bf16.msrb.mxu3 %v2110_v7 }
  0xdc   :  { %726 = vmatpush.bf16.msrb.mxu0 %v2115_v11  ;;  %739 = vmatpush.bf16.msrb.mxu1 %v2117_v15 }
  0xdd   :  { %752 = vmatpush.bf16.msrb.mxu2 %v2119_v16  ;;  %765 = vmatpush.bf16.msrb.mxu3 %v2122_v21 }
  0xe0   :  { %727 = vmatpush.bf16.msrb.mxu0 %v2129_v30  ;;  %740 = vmatpush.bf16.msrb.mxu1 %v2131_v32 }
  0xe1   :  { %753 = vmatpush.bf16.msrb.mxu2 %v2139_v38  ;;  %766 = vmatpush.bf16.msrb.mxu3 %v2142_v47 }
  0xe4   :  { %728 = vmatpush.bf16.msrb.mxu0 %v2146_v52  ;;  %741 = vmatpush.bf16.msrb.mxu1 %v2149_v58 }
  0xe5   :  { %754 = vmatpush.bf16.msrb.mxu2 %v2153_v63  ;;  %767 = vmatpush.bf16.msrb.mxu3 %v2155_v2 }
  0xe8   :  { %729 = vmatpush.bf16.msrb.mxu0 %v2162_v18  ;;  %742 = vmatpush.bf16.msrb.mxu1 %v2165_v20 }
  0xe9   :  { %755 = vmatpush.bf16.msrb.mxu2 %v2170_v24  ;;  %768 = vmatpush.bf16.msrb.mxu3 %v2172_v25 }
 0x147   :  { %v471_v53 = vpop.f32.mrf.mxu0  ;;  %v484_v57 = vpop.f32.mrf.mxu1 }
 0x148   :  { %v472_v59 = vadd.f32 %v471_v53, %v2266_v33  ;;  %v485_v61 = vadd.f32 %v484_v57, %v2268_v42 }
 0x14a   :  { %v526_v3 = vadd.f32 %v518_v36, %v472_v59  ;;  %v527_v51 = vadd.f32 %v519_v62, %v485_v61  ;;  %v2282_v36 = vperm.slane %v196_v29, 3 }
 0x14c   :  { %v1672_v9 = vmul.f32 -1.442695, %v526_v3  ;;  %v1673_v10 = vmul.f32 -1.442695, %v527_v51  ;;  %2582 = vst [vmem:[#allocation19_spill] sm:$0xff] %v2282_v36 }
 0x14e   :  { %1760 = vpow2.f32 %v1672_v9  ;;  %v497_v12 = vpop.f32.mrf.mxu2  ;;  %v510_v14 = vpop.f32.mrf.mxu3 }
 0x14f   :  { %1762 = vpow2.f32 %v1673_v10  ;;  %v498_v19 = vadd.f32 %v497_v12, %v2278_v8  ;;  %v473_v53 = vpop.f32.mrf.mxu0  ;;  %v486_v41 = vpop.f32.mrf.mxu1  ;;  %v511_v51 = vadd.f32 %v510_v14, %v2282_v36  ;;  %v521_v10 = vrot.slane %v2186_v45, 2 }
 0x151   :  { %v528_v6 = vadd.f32 %v520_v48, %v498_v19  ;;  %v529_v19 = vadd.f32 %v521_v10, %v511_v51 }
 0x153   :  { %v1674_v57 = vmul.f32 -1.442695, %v528_v6 }
 0x154   :  { %v1761_v5 = vpop.eup %1760 }
 0x155   :  { %v1763_v4 = vpop.eup %1762  ;;  %v539_v59 = vadd.f32 1.0, %v1761_v5  ;;  %1764 = vpow2.f32 %v1674_v57 }
 0x156   :  { %v540_v61 = vadd.f32 1.0, %v1763_v4  ;;  %v499_v62 = vpop.f32.mrf.mxu2  ;;  %v512_v3 = vpop.f32.mrf.mxu3 }
 0x157   :  { %1766 = vrcp.f32 %v539_v59  ;;  %v553_v57 = vand.u32 2147483648, %v539_v59  ;;  %v551_v3 = vand.u32 2147483647, %v539_v59  ;;  %vm547_vm0 = vweird.f32 %v539_v59 }
 0x158   :  { %1768 = vrcp.f32 %v540_v61  ;;  %v568_v4 = vand.u32 2147483648, %v540_v61  ;;  %v566_v14 = vand.u32 2147483647, %v540_v61  ;;  %vm562_vm1 = vweird.f32 %v540_v61 }
 0x159   :  { %vm552_vm4 = vcmp.eq.f32.partialorder %v551_v3, 8.507059e+37 }
 0x15a   :  { %vm567_vm5 = vcmp.eq.f32.partialorder %v566_v14, 8.507059e+37 }
 0x15b   :  { %v1765_v9 = vpop.eup %1764 }
 0x15c   :  { %v541_v12 = vadd.f32 1.0, %v1765_v9  ;;  %v554_v9 = vor.u32 1.1754944e-38, %v553_v57 }
 0x15d   :  { %v1767_v41 = vpop.eup %1766 }
 0x15e   :  { %v1769_v6 = vpop.eup %1768  ;;  %v543_v48 = vmul.f32 %v1767_v41, %v539_v59  ;;  %1770 = vrcp.f32 %v541_v12  ;;  %vm548_vm14 = vweird.f32 %v1767_v41  ;;  %vm577_vm7 = vweird.f32 %v541_v12 }
 0x15f   :  { %v558_v5 = vmul.f32 %v1769_v6, %v540_v61  ;;  %1772 = vtanh.f32 %v529_v19  ;;  %vm563_vm15 = vweird.f32 %v1769_v6  ;;  %vm549_vm2 = vmor %vm547_vm0, %vm548_vm14 }
 0x160   :  { %v544_v53 = vsub.f32 1.0, %v543_v48  ;;  %vm564_vm3 = vmor %vm562_vm1, %vm563_vm15  ;;  %v569_v48 = vor.u32 1.1754944e-38, %v568_v4 }
 0x161   :  { %v559_v29 = vsub.f32 1.0, %v558_v5 }
 0x162   :  { %v545_v62 = vmul.f32 %v1767_v41, %v544_v53 }
 0x163   :  { %v560_v34 = vmul.f32 %v1769_v6, %v559_v29 }
 0x164   :  { %v1771_v44 = vpop.eup %1770  ;;  %v546_v22 = vadd.f32 %v1767_v41, %v545_v62 }
 0x165   :  { %v573_v51 = vmul.f32 %v1771_v44, %v541_v12  ;;  %v561_v10 = vadd.f32 %v1769_v6, %v560_v34  ;;  %v1773_v19 = vpop.eup %1772  ;;  %vm578_vm6 = vweird.f32 %v1771_v44  ;;  %v583_v34 = vand.u32 2147483648, %v541_v12 }
 0x166   :  { %v550_v5 = vsel %vm549_vm2, %v1767_v41, %v546_v22  ;;  %v581_v22 = vand.u32 2147483647, %v541_v12  ;;  %vm579_vm8 = vmor %vm577_vm7, %vm578_vm6  ;;  %v647_v12 = vrot.slane %v2135_v37, 4 }
 0x167   :  { %v574_v13 = vsub.f32 1.0, %v573_v51  ;;  %v555_v53 = vsel %vm552_vm4, %v554_v9, %v550_v5  ;;  %v565_v54 = vsel %vm564_vm3, %v1769_v6, %v561_v10  ;;  %v584_v57 = vor.u32 1.1754944e-38, %v583_v34 }
 0x168   :  { %v570_v29 = vsel %vm567_vm5, %v569_v48, %v565_v54  ;;  %v589_v45 = vmul.f32 %v1773_v19, %v555_v53  ;;  %vm582_vm9 = vcmp.eq.f32.partialorder %v581_v22, 8.507059e+37  ;;  %v648_v53 = vrot.slane %v2159_v17, 4 }
 0x169   :  { %v588_v36 = vmul.f32 %v570_v29, %v2210_v49  ;;  %v575_v62 = vmul.f32 %v1771_v44, %v574_v13 }
 0x16b   :  { %v2287_v59 = vadd.f32 %v589_v45, %v588_v36  ;;  %v576_v61 = vadd.f32 %v1771_v44, %v575_v62 }
 0x16d   :  { %1774 = vtanh.f32 %v2287_v59  ;;  %v580_v41 = vsel %vm579_vm8, %v1771_v44, %v576_v61  ;;  %v646_v44 = vrot.slane %v2126_v26, 4 }
 0x16e   :  { %v585_v4 = vsel %vm582_vm9, %v584_v57, %v580_v41 }
 0x173   :  { %v1775_v6 = vpop.eup %1774 }
 0x174   :  { %v592_v54 = vmul.f32 %v1775_v6, %v585_v4 }
 0x176   :  { %v593_v3 = vpack.c.bf16 %v592_v54, %v592_v54 }
 0x178   :  { %602 = vmatmul.bf16.vlgmr.msra.gmra.mxu0 %v593_v3  ;;  %615 = vmatmul.bf16.vlgmr.msra.gmra.mxu1 %v593_v3 }
 0x179   :  { %628 = vmatmul.bf16.vlgmr.msra.gmra.mxu2 %v593_v3  ;;  %641 = vmatmul.bf16.vlgmr.msra.gmra.mxu3 %v593_v3  ;;  %v2583_v3 = vld [vmem:[#allocation19_spill] sm:$0xff] }
 0x17a   :  { %850 = vmatpush.bf16.msra.mxu0 %v2062_v23  ;;  %863 = vmatpush.bf16.msra.mxu1 %v2064_v27 }
 0x17b   :  { %876 = vmatpush.bf16.msra.mxu2 %v2066_v28  ;;  %889 = vmatpush.bf16.msra.mxu3 %v2069_v31 }
 0x17e   :  { %851 = vmatpush.bf16.msra.mxu0 %v2074_v35  ;;  %864 = vmatpush.bf16.msra.mxu1 %v2076_v39 }
 0x17f   :  { %877 = vmatpush.bf16.msra.mxu2 %v2078_v40  ;;  %890 = vmatpush.bf16.msra.mxu3 %v2081_v43 }
 0x182   :  { %852 = vmatpush.bf16.msra.mxu0 %v2086_v46  ;;  %865 = vmatpush.bf16.msra.mxu1 %v2088_v50 }
 0x183   :  { %878 = vmatpush.bf16.msra.mxu2 %v2093_v55  ;;  %891 = vmatpush.bf16.msra.mxu3 %v2095_v56 }
 0x186   :  { %853 = vmatpush.bf16.msra.mxu0 %v2100_v60  ;;  %866 = vmatpush.bf16.msra.mxu1 %v2102_v0 }
 0x187   :  { %879 = vmatpush.bf16.msra.mxu2 %v2104_v1  ;;  %892 = vmatpush.bf16.msra.mxu3 %v2110_v7 }
 0x18a   :  { %854 = vmatpush.bf16.msra.mxu0 %v2115_v11  ;;  %867 = vmatpush.bf16.msra.mxu1 %v2117_v15 }
 0x18b   :  { %880 = vmatpush.bf16.msra.mxu2 %v2119_v16  ;;  %893 = vmatpush.bf16.msra.mxu3 %v2122_v21 }
 0x18e   :  { %855 = vmatpush.bf16.msra.mxu0 %v2129_v30  ;;  %868 = vmatpush.bf16.msra.mxu1 %v2131_v32 }
 0x18f   :  { %881 = vmatpush.bf16.msra.mxu2 %v2139_v38  ;;  %894 = vmatpush.bf16.msra.mxu3 %v2142_v47 }
 0x192   :  { %856 = vmatpush.bf16.msra.mxu0 %v2146_v52  ;;  %869 = vmatpush.bf16.msra.mxu1 %v2149_v58 }
 0x193   :  { %882 = vmatpush.bf16.msra.mxu2 %v2153_v63  ;;  %895 = vmatpush.bf16.msra.mxu3 %v2155_v2 }
 0x196   :  { %857 = vmatpush.bf16.msra.mxu0 %v2162_v18  ;;  %870 = vmatpush.bf16.msra.mxu1 %v2165_v20 }
 0x197   :  { %883 = vmatpush.bf16.msra.mxu2 %v2170_v24  ;;  %896 = vmatpush.bf16.msra.mxu3 %v2172_v25 }
 0x1f5   :  { %v603_v45 = vpop.f32.mrf.mxu0  ;;  %v616_v49 = vpop.f32.mrf.mxu1 }
 0x1f6   :  { %v604_v13 = vadd.f32 %v603_v45, %v2266_v33  ;;  %v617_v36 = vadd.f32 %v616_v49, %v2268_v42 }
 0x1f8   :  { %v654_v14 = vadd.f32 %v646_v44, %v604_v13  ;;  %v655_v51 = vadd.f32 %v647_v12, %v617_v36  ;;  %v2584_v13 = vld [vmem:[#allocation14_spill] sm:$0xff] }
 0x1f9   :  { %v649_v44 = vrot.slane %v2584_v13, 4 }
 0x1fa   :  { %v1675_v9 = vmul.f32 -1.442695, %v654_v14  ;;  %v1676_v10 = vmul.f32 -1.442695, %v655_v51 }
 0x1fc   :  { %1776 = vpow2.f32 %v1675_v9  ;;  %v629_v48 = vpop.f32.mrf.mxu2  ;;  %v642_v5 = vpop.f32.mrf.mxu3 }
 0x1fd   :  { %1778 = vpow2.f32 %v1676_v10  ;;  %v630_v19 = vadd.f32 %v629_v48, %v2278_v8  ;;  %v605_v29 = vpop.f32.mrf.mxu0  ;;  %v618_v62 = vpop.f32.mrf.mxu1  ;;  %v643_v45 = vadd.f32 %v642_v5, %v2583_v3 }
 0x1ff   :  { %v656_v61 = vadd.f32 %v648_v53, %v630_v19  ;;  %v657_v14 = vadd.f32 %v649_v44, %v643_v45 }
 0x201   :  { %v1677_v34 = vmul.f32 -1.442695, %v656_v61 }
 0x202   :  { %v1777_v22 = vpop.eup %1776 }
 0x203   :  { %v1779_v41 = vpop.eup %1778  ;;  %v667_v57 = vadd.f32 1.0, %v1777_v22  ;;  %1780 = vpow2.f32 %v1677_v34 }
 0x204   :  { %v668_v6 = vadd.f32 1.0, %v1779_v41  ;;  %v631_v4 = vpop.f32.mrf.mxu2  ;;  %v644_v54 = vpop.f32.mrf.mxu3 }
 0x205   :  { %1782 = vrcp.f32 %v667_v57  ;;  %v681_v53 = vand.u32 2147483648, %v667_v57  ;;  %v679_v61 = vand.u32 2147483647, %v667_v57  ;;  %vm675_vm12 = vweird.f32 %v667_v57 }
 0x206   :  { %1784 = vrcp.f32 %v668_v6  ;;  %v696_v29 = vand.u32 2147483648, %v668_v6  ;;  %v694_v5 = vand.u32 2147483647, %v668_v6  ;;  %vm690_vm13 = vweird.f32 %v668_v6 }
 0x207   :  { %v682_v54 = vor.u32 1.1754944e-38, %v681_v53  ;;  %vm680_vm0 = vcmp.eq.f32.partialorder %v679_v61, 8.507059e+37 }
 0x208   :  { %vm695_vm1 = vcmp.eq.f32.partialorder %v694_v5, 8.507059e+37 }
 0x209   :  { %v1781_v49 = vpop.eup %1780 }
 0x20a   :  { %v669_v36 = vadd.f32 1.0, %v1781_v49  ;;  %v697_v49 = vor.u32 1.1754944e-38, %v696_v29 }
 0x20b   :  { %v1783_v12 = vpop.eup %1782 }
 0x20c   :  { %v1785_v51 = vpop.eup %1784  ;;  %v671_v9 = vmul.f32 %v1783_v12, %v667_v57  ;;  %1786 = vrcp.f32 %v669_v36  ;;  %vm676_vm10 = vweird.f32 %v1783_v12  ;;  %v711_v53 = vand.u32 2147483648, %v669_v36 }
 0x20d   :  { %v686_v10 = vmul.f32 %v1785_v51, %v668_v6  ;;  %1788 = vtanh.f32 %v657_v14  ;;  %vm691_vm11 = vweird.f32 %v1785_v51  ;;  %vm677_vm14 = vmor %vm675_vm12, %vm676_vm10  ;;  %vm705_vm3 = vweird.f32 %v669_v36 }
 0x20e   :  { %v672_v48 = vsub.f32 1.0, %v671_v9  ;;  %vm692_vm15 = vmor %vm690_vm13, %vm691_vm11  ;;  %v712_v61 = vor.u32 1.1754944e-38, %v711_v53 }
 0x20f   :  { %v687_v19 = vsub.f32 1.0, %v686_v10 }
 0x210   :  { %v673_v62 = vmul.f32 %v1783_v12, %v672_v48 }
 0x211   :  { %v688_v34 = vmul.f32 %v1785_v51, %v687_v19 }
 0x212   :  { %v1787_v22 = vpop.eup %1786  ;;  %v674_v41 = vadd.f32 %v1783_v12, %v673_v62 }
 0x213   :  { %v701_v4 = vmul.f32 %v1787_v22, %v669_v36  ;;  %v689_v45 = vadd.f32 %v1785_v51, %v688_v34  ;;  %v1789_v14 = vpop.eup %1788  ;;  %vm706_vm2 = vweird.f32 %v1787_v22 }
 0x214   :  { %v678_v44 = vsel %vm677_vm14, %v1783_v12, %v674_v41  ;;  %v709_v12 = vand.u32 2147483647, %v669_v36  ;;  %vm707_vm4 = vmor %vm705_vm3, %vm706_vm2  ;;  %v774_v36 = vrot.slane %v2126_v26, 6 }
 0x215   :  { %v702_v9 = vsub.f32 1.0, %v701_v4  ;;  %v683_v10 = vsel %vm680_vm0, %v682_v54, %v678_v44  ;;  %v693_v48 = vsel %vm692_vm15, %v1785_v51, %v689_v45  ;;  %v775_v4 = vrot.slane %v2135_v37, 6 }
 0x216   :  { %v698_v19 = vsel %vm695_vm1, %v697_v49, %v693_v48  ;;  %v717_v13 = vmul.f32 %v1789_v14, %v683_v10  ;;  %vm710_vm5 = vcmp.eq.f32.partialorder %v709_v12, 8.507059e+37  ;;  %v776_v48 = vrot.slane %v2159_v17, 6 }
 0x217   :  { %v716_v3 = vmul.f32 %v698_v19, %v2287_v59  ;;  %v703_v62 = vmul.f32 %v1787_v22, %v702_v9 }
 0x219   :  { %v2331_v57 = vadd.f32 %v717_v13, %v716_v3  ;;  %v704_v6 = vadd.f32 %v1787_v22, %v703_v62 }
 0x21b   :  { %1790 = vtanh.f32 %v2331_v57  ;;  %v708_v29 = vsel %vm707_vm4, %v1787_v22, %v704_v6 }
 0x21c   :  { %v713_v34 = vsel %vm710_vm5, %v712_v61, %v708_v29 }
 0x221   :  { %v1791_v51 = vpop.eup %1790 }
 0x222   :  { %v720_v5 = vmul.f32 %v1791_v51, %v713_v34  ;;  %v2585_v34 = vld [vmem:[#allocation19_spill] sm:$0xff] }
 0x224   :  { %v721_v41 = vpack.c.bf16 %v720_v5, %v720_v5 }
 0x226   :  { %730 = vmatmul.bf16.vlgmr.msrb.gmra.mxu0 %v721_v41  ;;  %743 = vmatmul.bf16.vlgmr.msrb.gmra.mxu1 %v721_v41 }
 0x227   :  { %756 = vmatmul.bf16.vlgmr.msrb.gmra.mxu2 %v721_v41  ;;  %769 = vmatmul.bf16.vlgmr.msrb.gmra.mxu3 %v721_v41 }
 0x228   :  { %970 = vmatpush.bf16.msrb.mxu0 %v2062_v23  ;;  %983 = vmatpush.bf16.msrb.mxu1 %v2064_v27 }
 0x229   :  { %996 = vmatpush.bf16.msrb.mxu2 %v2066_v28  ;;  %1009 = vmatpush.bf16.msrb.mxu3 %v2069_v31 }
 0x22c   :  { %971 = vmatpush.bf16.msrb.mxu0 %v2074_v35  ;;  %984 = vmatpush.bf16.msrb.mxu1 %v2076_v39 }
 0x22d   :  { %997 = vmatpush.bf16.msrb.mxu2 %v2078_v40  ;;  %1010 = vmatpush.bf16.msrb.mxu3 %v2081_v43 }
 0x230   :  { %972 = vmatpush.bf16.msrb.mxu0 %v2086_v46  ;;  %985 = vmatpush.bf16.msrb.mxu1 %v2088_v50 }
 0x231   :  { %998 = vmatpush.bf16.msrb.mxu2 %v2093_v55  ;;  %1011 = vmatpush.bf16.msrb.mxu3 %v2095_v56 }
 0x234   :  { %973 = vmatpush.bf16.msrb.mxu0 %v2100_v60  ;;  %986 = vmatpush.bf16.msrb.mxu1 %v2102_v0 }
 0x235   :  { %999 = vmatpush.bf16.msrb.mxu2 %v2104_v1  ;;  %1012 = vmatpush.bf16.msrb.mxu3 %v2110_v7 }
 0x238   :  { %974 = vmatpush.bf16.msrb.mxu0 %v2115_v11  ;;  %987 = vmatpush.bf16.msrb.mxu1 %v2117_v15 }
 0x239   :  { %1000 = vmatpush.bf16.msrb.mxu2 %v2119_v16  ;;  %1013 = vmatpush.bf16.msrb.mxu3 %v2122_v21 }
 0x23c   :  { %975 = vmatpush.bf16.msrb.mxu0 %v2129_v30  ;;  %988 = vmatpush.bf16.msrb.mxu1 %v2131_v32 }
 0x23d   :  { %1001 = vmatpush.bf16.msrb.mxu2 %v2139_v38  ;;  %1014 = vmatpush.bf16.msrb.mxu3 %v2142_v47 }
 0x240   :  { %976 = vmatpush.bf16.msrb.mxu0 %v2146_v52  ;;  %989 = vmatpush.bf16.msrb.mxu1 %v2149_v58 }
 0x241   :  { %1002 = vmatpush.bf16.msrb.mxu2 %v2153_v63  ;;  %1015 = vmatpush.bf16.msrb.mxu3 %v2155_v2 }
 0x244   :  { %977 = vmatpush.bf16.msrb.mxu0 %v2162_v18  ;;  %990 = vmatpush.bf16.msrb.mxu1 %v2165_v20 }
 0x245   :  { %1003 = vmatpush.bf16.msrb.mxu2 %v2170_v24  ;;  %1016 = vmatpush.bf16.msrb.mxu3 %v2172_v25 }
 0x2a3   :  { %v731_v59 = vpop.f32.mrf.mxu0  ;;  %v744_v3 = vpop.f32.mrf.mxu1 }
 0x2a4   :  { %v732_v13 = vadd.f32 %v731_v59, %v2266_v33  ;;  %v745_v22 = vadd.f32 %v744_v3, %v2268_v42  ;;  %v2586_v59 = vld [vmem:[#allocation14_spill] sm:$0xff] }
 0x2a5   :  { %v777_v3 = vrot.slane %v2586_v59, 6 }
 0x2a6   :  { %v782_v54 = vadd.f32 %v774_v36, %v732_v13  ;;  %v783_v45 = vadd.f32 %v775_v4, %v745_v22 }
 0x2a8   :  { %v1678_v49 = vmul.f32 -1.442695, %v782_v54  ;;  %v1679_v44 = vmul.f32 -1.442695, %v783_v45 }
 0x2aa   :  { %1792 = vpow2.f32 %v1678_v49  ;;  %v757_v14 = vpop.f32.mrf.mxu2  ;;  %v770_v9 = vpop.f32.mrf.mxu3 }
 0x2ab   :  { %1794 = vpow2.f32 %v1679_v44  ;;  %v758_v10 = vadd.f32 %v757_v14, %v2278_v8  ;;  %v733_v19 = vpop.f32.mrf.mxu0  ;;  %v746_v62 = vpop.f32.mrf.mxu1  ;;  %v771_v5 = vadd.f32 %v770_v9, %v2585_v34 }
 0x2ad   :  { %v784_v6 = vadd.f32 %v776_v48, %v758_v10  ;;  %v785_v36 = vadd.f32 %v777_v3, %v771_v5 }
 0x2af   :  { %v1680_v26 = vmul.f32 -1.442695, %v784_v6 }
 0x2b0   :  { %v1793_v53 = vpop.eup %1792 }
 0x2b1   :  { %v1795_v12 = vpop.eup %1794  ;;  %v795_v29 = vadd.f32 1.0, %v1793_v53  ;;  %1796 = vpow2.f32 %v1680_v26 }
 0x2b2   :  { %v796_v37 = vadd.f32 1.0, %v1795_v12  ;;  %v759_v61 = vpop.f32.mrf.mxu2  ;;  %v772_v51 = vpop.f32.mrf.mxu3 }
 0x2b3   :  { %1798 = vrcp.f32 %v795_v29  ;;  %v809_v44 = vand.u32 2147483648, %v795_v29  ;;  %v807_v48 = vand.u32 2147483647, %v795_v29  ;;  %vm803_vm8 = vweird.f32 %v795_v29 }
 0x2b4   :  { %1800 = vrcp.f32 %v796_v37  ;;  %v824_v14 = vand.u32 2147483648, %v796_v37  ;;  %v822_v9 = vand.u32 2147483647, %v796_v37  ;;  %vm818_vm9 = vweird.f32 %v796_v37 }
 0x2b5   :  { %v810_v53 = vor.u32 1.1754944e-38, %v809_v44  ;;  %vm808_vm12 = vcmp.eq.f32.partialorder %v807_v48, 8.507059e+37 }
 0x2b6   :  { %v825_v61 = vor.u32 1.1754944e-38, %v824_v14  ;;  %vm823_vm13 = vcmp.eq.f32.partialorder %v822_v9, 8.507059e+37  ;;  %v2587_v9 = vld [vmem:[#allocation13_spill] sm:$0xff] }
 0x2b7   :  { %v1797_v41 = vpop.eup %1796 }
 0x2b8   :  { %v797_v13 = vadd.f32 1.0, %v1797_v41 }
 0x2b9   :  { %v1799_v17 = vpop.eup %1798 }
 0x2ba   :  { %v1801_v22 = vpop.eup %1800  ;;  %v799_v4 = vmul.f32 %v1799_v17, %v795_v29  ;;  %1802 = vrcp.f32 %v797_v13  ;;  %vm804_vm6 = vweird.f32 %v1799_v17  ;;  %vm833_vm15 = vweird.f32 %v797_v13 }
 0x2bb   :  { %v814_v54 = vmul.f32 %v1801_v22, %v796_v37  ;;  %1804 = vtanh.f32 %v785_v36  ;;  %vm819_vm7 = vweird.f32 %v1801_v22  ;;  %vm805_vm10 = vmor %vm803_vm8, %vm804_vm6 }
 0x2bc   :  { %v800_v45 = vsub.f32 1.0, %v799_v4  ;;  %vm820_vm11 = vmor %vm818_vm9, %vm819_vm7 }
 0x2bd   :  { %v815_v49 = vsub.f32 1.0, %v814_v54 }
 0x2be   :  { %v801_v10 = vmul.f32 %v1799_v17, %v800_v45 }
 0x2bf   :  { %v816_v19 = vmul.f32 %v1801_v22, %v815_v49  ;;  %v839_v49 = vand.u32 2147483648, %v797_v13 }
 0x2c0   :  { %v1803_v62 = vpop.eup %1802  ;;  %v802_v6 = vadd.f32 %v1799_v17, %v801_v10 }
 0x2c1   :  { %v829_v26 = vmul.f32 %v1803_v62, %v797_v13  ;;  %v817_v12 = vadd.f32 %v1801_v22, %v816_v19  ;;  %v1805_v5 = vpop.eup %1804  ;;  %vm834_vm14 = vweird.f32 %v1803_v62  ;;  %v840_v14 = vor.u32 1.1754944e-38, %v839_v49 }
 0x2c2   :  { %v806_v51 = vsel %vm805_vm10, %v1799_v17, %v802_v6  ;;  %v837_v17 = vand.u32 2147483647, %v797_v13  ;;  %vm835_vm0 = vmor %vm833_vm15, %vm834_vm14  ;;  %v2589_v6 = vld [vmem:[#allocation15_spill] sm:$0xff] }
 0x2c3   :  { %v830_v41 = vsub.f32 1.0, %v829_v26  ;;  %v811_v59 = vsel %vm808_vm12, %v810_v53, %v806_v51  ;;  %v821_v3 = vsel %vm820_vm11, %v1801_v22, %v817_v12  ;;  %v2590_v53 = vperm.slane %v2587_v9, 1  ;;  %v2591_v12 = vld [vmem:[#allocation16_spill] sm:$0xff] }
 0x2c4   :  { %v826_v36 = vsel %vm823_vm13, %v825_v61, %v821_v3  ;;  %v845_v4 = vmul.f32 %v1805_v5, %v811_v59  ;;  %vm838_vm1 = vcmp.eq.f32.partialorder %v837_v17, 8.507059e+37 }
 0x2c5   :  { %v844_v54 = vmul.f32 %v826_v36, %v2331_v57  ;;  %v831_v45 = vmul.f32 %v1803_v62, %v830_v41  ;;  %v2418_v61 = vadd.f32 %v2591_v12, %v2590_v53 }
 0x2c7   :  { %v2375_v29 = vadd.f32 %v845_v4, %v844_v54  ;;  %v832_v37 = vadd.f32 %v1803_v62, %v831_v45  ;;  %v2592_v45 = vperm.slane %v2587_v9, 2 }
 0x2c9   :  { %1806 = vtanh.f32 %v2375_v29  ;;  %v836_v44 = vsel %vm835_vm0, %v1803_v62, %v832_v37  ;;  %v2588_v62 = vperm.slane %v2587_v9, 0  ;;  %v2593_v37 = vld [vmem:[#allocation17_spill] sm:$0xff] }
 0x2ca   :  { %v841_v10 = vsel %vm838_vm1, %v840_v14, %v836_v44  ;;  %v2427_v49 = vadd.f32 %v2593_v37, %v2592_v45 }
 0x2cb   :  { %v2413_v26 = vadd.f32 %v2589_v6, %v2588_v62 }
 0x2cf   :  { %v1807_v22 = vpop.eup %1806 }
 0x2d0   :  { %v848_v48 = vmul.f32 %v1807_v22, %v841_v10 }
 0x2d2   :  { %v849_v19 = vpack.c.bf16 %v848_v48, %v848_v48 }
 0x2d4   :  { %858 = vmatmul.bf16.vlgmr.msra.gmra.mxu0 %v849_v19  ;;  %871 = vmatmul.bf16.vlgmr.msra.gmra.mxu1 %v849_v19 }
 0x2d5   :  { %884 = vmatmul.bf16.vlgmr.msra.gmra.mxu2 %v849_v19  ;;  %897 = vmatmul.bf16.vlgmr.msra.gmra.mxu3 %v849_v19 }
 0x2d6   :  { %1102 = vmatpush.bf16.msra.mxu0 %v2062_v23  ;;  %1115 = vmatpush.bf16.msra.mxu1 %v2064_v27 }
 0x2d7   :  { %1128 = vmatpush.bf16.msra.mxu2 %v2066_v28  ;;  %1141 = vmatpush.bf16.msra.mxu3 %v2069_v31 }
 0x2da   :  { %1103 = vmatpush.bf16.msra.mxu0 %v2074_v35  ;;  %1116 = vmatpush.bf16.msra.mxu1 %v2076_v39 }
 0x2db   :  { %1129 = vmatpush.bf16.msra.mxu2 %v2078_v40  ;;  %1142 = vmatpush.bf16.msra.mxu3 %v2081_v43 }
 0x2de   :  { %1104 = vmatpush.bf16.msra.mxu0 %v2086_v46  ;;  %1117 = vmatpush.bf16.msra.mxu1 %v2088_v50 }
 0x2df   :  { %1130 = vmatpush.bf16.msra.mxu2 %v2093_v55  ;;  %1143 = vmatpush.bf16.msra.mxu3 %v2095_v56 }
 0x2e2   :  { %1105 = vmatpush.bf16.msra.mxu0 %v2100_v60  ;;  %1118 = vmatpush.bf16.msra.mxu1 %v2102_v0 }
 0x2e3   :  { %1131 = vmatpush.bf16.msra.mxu2 %v2104_v1  ;;  %1144 = vmatpush.bf16.msra.mxu3 %v2110_v7 }
 0x2e6   :  { %1106 = vmatpush.bf16.msra.mxu0 %v2115_v11  ;;  %1119 = vmatpush.bf16.msra.mxu1 %v2117_v15 }
 0x2e7   :  { %1132 = vmatpush.bf16.msra.mxu2 %v2119_v16  ;;  %1145 = vmatpush.bf16.msra.mxu3 %v2122_v21 }
 0x2ea   :  { %1107 = vmatpush.bf16.msra.mxu0 %v2129_v30  ;;  %1120 = vmatpush.bf16.msra.mxu1 %v2131_v32 }
 0x2eb   :  { %1133 = vmatpush.bf16.msra.mxu2 %v2139_v38  ;;  %1146 = vmatpush.bf16.msra.mxu3 %v2142_v47 }
 0x2ee   :  { %1108 = vmatpush.bf16.msra.mxu0 %v2146_v52  ;;  %1121 = vmatpush.bf16.msra.mxu1 %v2149_v58 }
 0x2ef   :  { %1134 = vmatpush.bf16.msra.mxu2 %v2153_v63  ;;  %1147 = vmatpush.bf16.msra.mxu3 %v2155_v2 }
 0x2f2   :  { %1109 = vmatpush.bf16.msra.mxu0 %v2162_v18  ;;  %1122 = vmatpush.bf16.msra.mxu1 %v2165_v20 }
 0x2f3   :  { %1135 = vmatpush.bf16.msra.mxu2 %v2170_v24  ;;  %1148 = vmatpush.bf16.msra.mxu3 %v2172_v25 }
 0x351   :  { %v859_v57 = vpop.f32.mrf.mxu0  ;;  %v872_v13 = vpop.f32.mrf.mxu1 }
 0x352   :  { %v860_v51 = vadd.f32 %v859_v57, %v2266_v33  ;;  %v873_v5 = vadd.f32 %v872_v13, %v2268_v42 }
 0x354   :  { %v902_v41 = vadd.f32 %v860_v51, %v2413_v26  ;;  %v903_v59 = vadd.f32 %v873_v5, %v2418_v61  ;;  %v2594_v51 = vperm.slane %v2587_v9, 3  ;;  %v2595_v5 = vld [vmem:[#allocation18_spill] sm:$0xff] }
 0x356   :  { %v1681_v3 = vmul.f32 -1.442695, %v902_v41  ;;  %v1682_v36 = vmul.f32 -1.442695, %v903_v59  ;;  %v2435_v41 = vadd.f32 %v2595_v5, %v2594_v51 }
 0x358   :  { %1808 = vpow2.f32 %v1681_v3  ;;  %v885_v4 = vpop.f32.mrf.mxu2  ;;  %v898_v54 = vpop.f32.mrf.mxu3  ;;  %2596 = vst [vmem:[#allocation14_spill] sm:$0xff] %v2435_v41 }
 0x359   :  { %1810 = vpow2.f32 %v1682_v36  ;;  %v886_v17 = vadd.f32 %v885_v4, %v2278_v8  ;;  %v861_v44 = vpop.f32.mrf.mxu0  ;;  %v874_v14 = vpop.f32.mrf.mxu1  ;;  %v899_v53 = vadd.f32 %v898_v54, %v2585_v34 }
 0x35b   :  { %v904_v22 = vadd.f32 %v886_v17, %v2427_v49  ;;  %v905_v36 = vadd.f32 %v899_v53, %v2435_v41 }
 0x35d   :  { %v1683_v10 = vmul.f32 -1.442695, %v904_v22 }
 0x35e   :  { %v1809_v48 = vpop.eup %1808 }
 0x35f   :  { %v1811_v19 = vpop.eup %1810  ;;  %v915_v57 = vadd.f32 1.0, %v1809_v48  ;;  %1812 = vpow2.f32 %v1683_v10 }
 0x360   :  { %v916_v13 = vadd.f32 1.0, %v1811_v19  ;;  %v887_v62 = vpop.f32.mrf.mxu2  ;;  %v900_v6 = vpop.f32.mrf.mxu3 }
 0x361   :  { %1814 = vrcp.f32 %v915_v57  ;;  %v929_v14 = vand.u32 2147483648, %v915_v57  ;;  %v927_v10 = vand.u32 2147483647, %v915_v57  ;;  %vm923_vm4 = vweird.f32 %v915_v57 }
 0x362   :  { %1816 = vrcp.f32 %v916_v13  ;;  %v944_v22 = vand.u32 2147483648, %v916_v13  ;;  %v942_v48 = vand.u32 2147483647, %v916_v13  ;;  %vm938_vm5 = vweird.f32 %v916_v13 }
 0x363   :  { %v930_v53 = vor.u32 1.1754944e-38, %v929_v14  ;;  %vm928_vm8 = vcmp.eq.f32.partialorder %v927_v10, 8.507059e+37 }
 0x364   :  { %v945_v51 = vor.u32 1.1754944e-38, %v944_v22  ;;  %vm943_vm9 = vcmp.eq.f32.partialorder %v942_v48, 8.507059e+37 }
 0x365   :  { %v1813_v12 = vpop.eup %1812 }
 0x366   :  { %v917_v59 = vadd.f32 1.0, %v1813_v12 }
 0x367   :  { %v1815_v3 = vpop.eup %1814 }
 0x368   :  { %v1817_v4 = vpop.eup %1816  ;;  %v919_v45 = vmul.f32 %v1815_v3, %v915_v57  ;;  %1818 = vrcp.f32 %v917_v59  ;;  %vm924_vm2 = vweird.f32 %v1815_v3  ;;  %v959_v14 = vand.u32 2147483648, %v917_v59 }
 0x369   :  { %v934_v37 = vmul.f32 %v1817_v4, %v916_v13  ;;  %1820 = vtanh.f32 %v905_v36  ;;  %vm939_vm3 = vweird.f32 %v1817_v4  ;;  %vm925_vm6 = vmor %vm923_vm4, %vm924_vm2  ;;  %vm953_vm11 = vweird.f32 %v917_v59 }
 0x36a   :  { %v920_v17 = vsub.f32 1.0, %v919_v45  ;;  %vm940_vm7 = vmor %vm938_vm5, %vm939_vm3  ;;  %v960_v10 = vor.u32 1.1754944e-38, %v959_v14 }
 0x36b   :  { %v935_v44 = vsub.f32 1.0, %v934_v37 }
 0x36c   :  { %v921_v54 = vmul.f32 %v1815_v3, %v920_v17 }
 0x36d   :  { %v936_v9 = vmul.f32 %v1817_v4, %v935_v44 }
 0x36e   :  { %v1819_v19 = vpop.eup %1818  ;;  %v922_v62 = vadd.f32 %v1815_v3, %v921_v54 }
 0x36f   :  { %v949_v6 = vmul.f32 %v1819_v19, %v917_v59  ;;  %v937_v12 = vadd.f32 %v1817_v4, %v936_v9  ;;  %v1821_v36 = vpop.eup %1820  ;;  %vm954_vm10 = vweird.f32 %v1819_v19 }
 0x370   :  { %v926_v5 = vsel %vm925_vm6, %v1815_v3, %v922_v62  ;;  %v957_v3 = vand.u32 2147483647, %v917_v59  ;;  %vm955_vm12 = vmor %vm953_vm11, %vm954_vm10  ;;  %v1026_v59 = vrot.slane %v2413_v26, 2 }
 0x371   :  { %v950_v45 = vsub.f32 1.0, %v949_v6  ;;  %v931_v37 = vsel %vm928_vm8, %v930_v53, %v926_v5  ;;  %v941_v17 = vsel %vm940_vm7, %v1817_v4, %v937_v12  ;;  %v1027_v6 = vrot.slane %v2418_v61, 2 }
 0x372   :  { %v946_v44 = vsel %vm943_vm9, %v945_v51, %v941_v17  ;;  %v965_v41 = vmul.f32 %v1821_v36, %v931_v37  ;;  %vm958_vm13 = vcmp.eq.f32.partialorder %v957_v3, 8.507059e+37  ;;  %v1028_v17 = vrot.slane %v2427_v49, 2 }
 0x373   :  { %v964_v34 = vmul.f32 %v946_v44, %v2375_v29  ;;  %v951_v54 = vmul.f32 %v1819_v19, %v950_v45 }
 0x375   :  { %v2439_v57 = vadd.f32 %v965_v41, %v964_v34  ;;  %v952_v13 = vadd.f32 %v1819_v19, %v951_v54 }
 0x377   :  { %1822 = vtanh.f32 %v2439_v57  ;;  %v956_v22 = vsel %vm955_vm12, %v1819_v19, %v952_v13 }
 0x378   :  { %v961_v9 = vsel %vm958_vm13, %v960_v10, %v956_v22 }
 0x37d   :  { %v1823_v4 = vpop.eup %1822 }
 0x37e   :  { %v968_v48 = vmul.f32 %v1823_v4, %v961_v9 }
 0x380   :  { %v969_v62 = vpack.c.bf16 %v968_v48, %v968_v48 }
 0x382   :  { %978 = vmatmul.bf16.vlgmr.msrb.gmra.mxu0 %v969_v62  ;;  %991 = vmatmul.bf16.vlgmr.msrb.gmra.mxu1 %v969_v62 }
 0x383   :  { %1004 = vmatmul.bf16.vlgmr.msrb.gmra.mxu2 %v969_v62  ;;  %1017 = vmatmul.bf16.vlgmr.msrb.gmra.mxu3 %v969_v62  ;;  %v2597_v62 = vld [vmem:[#allocation19_spill] sm:$0xff] }
 0x384   :  { %1230 = vmatpush.bf16.msrb.mxu0 %v2062_v23  ;;  %1243 = vmatpush.bf16.msrb.mxu1 %v2064_v27 }
 0x385   :  { %1256 = vmatpush.bf16.msrb.mxu2 %v2066_v28  ;;  %1269 = vmatpush.bf16.msrb.mxu3 %v2069_v31 }
 0x388   :  { %1231 = vmatpush.bf16.msrb.mxu0 %v2074_v35  ;;  %1244 = vmatpush.bf16.msrb.mxu1 %v2076_v39 }
 0x389   :  { %1257 = vmatpush.bf16.msrb.mxu2 %v2078_v40  ;;  %1270 = vmatpush.bf16.msrb.mxu3 %v2081_v43 }
 0x38c   :  { %1232 = vmatpush.bf16.msrb.mxu0 %v2086_v46  ;;  %1245 = vmatpush.bf16.msrb.mxu1 %v2088_v50 }
 0x38d   :  { %1258 = vmatpush.bf16.msrb.mxu2 %v2093_v55  ;;  %1271 = vmatpush.bf16.msrb.mxu3 %v2095_v56 }
 0x390   :  { %1233 = vmatpush.bf16.msrb.mxu0 %v2100_v60  ;;  %1246 = vmatpush.bf16.msrb.mxu1 %v2102_v0 }
 0x391   :  { %1259 = vmatpush.bf16.msrb.mxu2 %v2104_v1  ;;  %1272 = vmatpush.bf16.msrb.mxu3 %v2110_v7 }
 0x394   :  { %1234 = vmatpush.bf16.msrb.mxu0 %v2115_v11  ;;  %1247 = vmatpush.bf16.msrb.mxu1 %v2117_v15 }
 0x395   :  { %1260 = vmatpush.bf16.msrb.mxu2 %v2119_v16  ;;  %1273 = vmatpush.bf16.msrb.mxu3 %v2122_v21 }
 0x398   :  { %1235 = vmatpush.bf16.msrb.mxu0 %v2129_v30  ;;  %1248 = vmatpush.bf16.msrb.mxu1 %v2131_v32 }
 0x399   :  { %1261 = vmatpush.bf16.msrb.mxu2 %v2139_v38  ;;  %1274 = vmatpush.bf16.msrb.mxu3 %v2142_v47 }
 0x39c   :  { %1236 = vmatpush.bf16.msrb.mxu0 %v2146_v52  ;;  %1249 = vmatpush.bf16.msrb.mxu1 %v2149_v58 }
 0x39d   :  { %1262 = vmatpush.bf16.msrb.mxu2 %v2153_v63  ;;  %1275 = vmatpush.bf16.msrb.mxu3 %v2155_v2 }
 0x3a0   :  { %1237 = vmatpush.bf16.msrb.mxu0 %v2162_v18  ;;  %1250 = vmatpush.bf16.msrb.mxu1 %v2165_v20 }
 0x3a1   :  { %1263 = vmatpush.bf16.msrb.mxu2 %v2170_v24  ;;  %1276 = vmatpush.bf16.msrb.mxu3 %v2172_v25 }
 0x3ff   :  { %v979_v34 = vpop.f32.mrf.mxu0  ;;  %v992_v29 = vpop.f32.mrf.mxu1 }
 0x400   :  { %v980_v41 = vadd.f32 %v979_v34, %v2266_v33  ;;  %v993_v19 = vadd.f32 %v992_v29, %v2268_v42 }
 0x402   :  { %v1034_v53 = vadd.f32 %v1026_v59, %v980_v41  ;;  %v1035_v12 = vadd.f32 %v1027_v6, %v993_v19  ;;  %v2598_v41 = vld [vmem:[#allocation14_spill] sm:$0xff] }
 0x403   :  { %v1029_v59 = vrot.slane %v2598_v41, 2 }
 0x404   :  { %v1684_v51 = vmul.f32 -1.442695, %v1034_v53  ;;  %v1685_v5 = vmul.f32 -1.442695, %v1035_v12 }
 0x406   :  { %1824 = vpow2.f32 %v1684_v51  ;;  %v1005_v36 = vpop.f32.mrf.mxu2  ;;  %v1018_v45 = vpop.f32.mrf.mxu3 }
 0x407   :  { %1826 = vpow2.f32 %v1685_v5  ;;  %v1006_v37 = vadd.f32 %v1005_v36, %v2278_v8  ;;  %v981_v44 = vpop.f32.mrf.mxu0  ;;  %v994_v54 = vpop.f32.mrf.mxu1  ;;  %v1019_v34 = vadd.f32 %v1018_v45, %v2597_v62 }
 0x409   :  { %v1036_v13 = vadd.f32 %v1028_v17, %v1006_v37  ;;  %v1037_v53 = vadd.f32 %v1029_v59, %v1019_v34 }
 0x40b   :  { %v1686_v14 = vmul.f32 -1.442695, %v1036_v13 }
 0x40c   :  { %v1825_v3 = vpop.eup %1824 }
 0x40d   :  { %v1827_v22 = vpop.eup %1826  ;;  %v1047_v10 = vadd.f32 1.0, %v1825_v3  ;;  %1828 = vpow2.f32 %v1686_v14 }
 0x40e   :  { %v1048_v4 = vadd.f32 1.0, %v1827_v22  ;;  %v1007_v9 = vpop.f32.mrf.mxu2  ;;  %v1020_v48 = vpop.f32.mrf.mxu3 }
 0x40f   :  { %1830 = vrcp.f32 %v1047_v10  ;;  %v1061_v17 = vand.u32 2147483648, %v1047_v10  ;;  %v1059_v13 = vand.u32 2147483647, %v1047_v10  ;;  %vm1055_vm0 = vweird.f32 %v1047_v10 }
 0x410   :  { %1832 = vrcp.f32 %v1048_v4  ;;  %v1076_v44 = vand.u32 2147483648, %v1048_v4  ;;  %v1074_v45 = vand.u32 2147483647, %v1048_v4  ;;  %vm1070_vm1 = vweird.f32 %v1048_v4 }
 0x411   :  { %v1062_v48 = vor.u32 1.1754944e-38, %v1061_v17  ;;  %vm1060_vm4 = vcmp.eq.f32.partialorder %v1059_v13, 8.507059e+37 }
 0x412   :  { %vm1075_vm5 = vcmp.eq.f32.partialorder %v1074_v45, 8.507059e+37 }
 0x413   :  { %v1829_v29 = vpop.eup %1828 }
 0x414   :  { %v1049_v19 = vadd.f32 1.0, %v1829_v29  ;;  %v1077_v29 = vor.u32 1.1754944e-38, %v1076_v44 }
 0x415   :  { %v1831_v6 = vpop.eup %1830 }
 0x416   :  { %v1833_v12 = vpop.eup %1832  ;;  %v1051_v51 = vmul.f32 %v1831_v6, %v1047_v10  ;;  %1834 = vrcp.f32 %v1049_v19  ;;  %vm1056_vm14 = vweird.f32 %v1831_v6  ;;  %v1091_v17 = vand.u32 2147483648, %v1049_v19 }
 0x417   :  { %v1066_v5 = vmul.f32 %v1833_v12, %v1048_v4  ;;  %1836 = vtanh.f32 %v1037_v53  ;;  %vm1071_vm15 = vweird.f32 %v1833_v12  ;;  %vm1057_vm2 = vmor %vm1055_vm0, %vm1056_vm14  ;;  %vm1085_vm7 = vweird.f32 %v1049_v19 }
 0x418   :  { %v1052_v36 = vsub.f32 1.0, %v1051_v51  ;;  %vm1072_vm3 = vmor %vm1070_vm1, %vm1071_vm15  ;;  %v1092_v13 = vor.u32 1.1754944e-38, %v1091_v17 }
 0x419   :  { %v1067_v37 = vsub.f32 1.0, %v1066_v5 }
 0x41a   :  { %v1053_v54 = vmul.f32 %v1831_v6, %v1052_v36 }
 0x41b   :  { %v1068_v14 = vmul.f32 %v1833_v12, %v1067_v37 }
 0x41c   :  { %v1835_v3 = vpop.eup %1834  ;;  %v1054_v22 = vadd.f32 %v1831_v6, %v1053_v54 }
 0x41d   :  { %v1081_v9 = vmul.f32 %v1835_v3, %v1049_v19  ;;  %v1069_v34 = vadd.f32 %v1833_v12, %v1068_v14  ;;  %v1837_v53 = vpop.eup %1836  ;;  %vm1086_vm6 = vweird.f32 %v1835_v3 }
 0x41e   :  { %v1058_v59 = vsel %vm1057_vm2, %v1831_v6, %v1054_v22  ;;  %v1089_v6 = vand.u32 2147483647, %v1049_v19  ;;  %vm1087_vm8 = vmor %vm1085_vm7, %vm1086_vm6 }
 0x41f   :  { %v1082_v51 = vsub.f32 1.0, %v1081_v9  ;;  %v1063_v5 = vsel %vm1060_vm4, %v1062_v48, %v1058_v59  ;;  %v1073_v36 = vsel %vm1072_vm3, %v1833_v12, %v1069_v34 }
 0x420   :  { %v1078_v37 = vsel %vm1075_vm5, %v1077_v29, %v1073_v36  ;;  %v1097_v41 = vmul.f32 %v1837_v53, %v1063_v5  ;;  %vm1090_vm9 = vcmp.eq.f32.partialorder %v1089_v6, 8.507059e+37 }
 0x421   :  { %v1096_v62 = vmul.f32 %v1078_v37, %v2439_v57  ;;  %v1083_v54 = vmul.f32 %v1835_v3, %v1082_v51 }
 0x423   :  { %v2483_v10 = vadd.f32 %v1097_v41, %v1096_v62  ;;  %v1084_v4 = vadd.f32 %v1835_v3, %v1083_v54 }
 0x425   :  { %1838 = vtanh.f32 %v2483_v10  ;;  %v1088_v44 = vsel %vm1087_vm8, %v1835_v3, %v1084_v4 }
 0x426   :  { %v1093_v14 = vsel %vm1090_vm9, %v1092_v13, %v1088_v44 }
 0x42b   :  { %v1839_v12 = vpop.eup %1838 }
 0x42c   :  { %v1100_v45 = vmul.f32 %v1839_v12, %v1093_v14 }
 0x42e   :  { %v1101_v22 = vpack.c.bf16 %v1100_v45, %v1100_v45 }
 0x430   :  { %1110 = vmatmul.bf16.vlgmr.msra.gmra.mxu0 %v1101_v22  ;;  %1123 = vmatmul.bf16.vlgmr.msra.gmra.mxu1 %v1101_v22 }
 0x431   :  { %1136 = vmatmul.bf16.vlgmr.msra.gmra.mxu2 %v1101_v22  ;;  %1149 = vmatmul.bf16.vlgmr.msra.gmra.mxu3 %v1101_v22 }
 0x432   :  { %1358 = vmatpush.bf16.msra.mxu0 %v2062_v23  ;;  %1371 = vmatpush.bf16.msra.mxu1 %v2064_v27 }
 0x433   :  { %1384 = vmatpush.bf16.msra.mxu2 %v2066_v28  ;;  %1397 = vmatpush.bf16.msra.mxu3 %v2069_v31  ;;  %v1154_v31 = vrot.slane %v2413_v26, 4 }
 0x436   :  { %1359 = vmatpush.bf16.msra.mxu0 %v2074_v35  ;;  %1372 = vmatpush.bf16.msra.mxu1 %v2076_v39  ;;  %v1155_v39 = vrot.slane %v2418_v61, 4 }
 0x437   :  { %1385 = vmatpush.bf16.msra.mxu2 %v2078_v40  ;;  %1398 = vmatpush.bf16.msra.mxu3 %v2081_v43 }
 0x43a   :  { %1360 = vmatpush.bf16.msra.mxu0 %v2086_v46  ;;  %1373 = vmatpush.bf16.msra.mxu1 %v2088_v50 }
 0x43b   :  { %1386 = vmatpush.bf16.msra.mxu2 %v2093_v55  ;;  %1399 = vmatpush.bf16.msra.mxu3 %v2095_v56 }
 0x43e   :  { %1361 = vmatpush.bf16.msra.mxu0 %v2100_v60  ;;  %1374 = vmatpush.bf16.msra.mxu1 %v2102_v0  ;;  %v1156_v0 = vrot.slane %v2427_v49, 4 }
 0x43f   :  { %1387 = vmatpush.bf16.msra.mxu2 %v2104_v1  ;;  %1400 = vmatpush.bf16.msra.mxu3 %v2110_v7 }
 0x442   :  { %1362 = vmatpush.bf16.msra.mxu0 %v2115_v11  ;;  %1375 = vmatpush.bf16.msra.mxu1 %v2117_v15 }
 0x443   :  { %1388 = vmatpush.bf16.msra.mxu2 %v2119_v16  ;;  %1401 = vmatpush.bf16.msra.mxu3 %v2122_v21 }
 0x446   :  { %1363 = vmatpush.bf16.msra.mxu0 %v2129_v30  ;;  %1376 = vmatpush.bf16.msra.mxu1 %v2131_v32 }
 0x447   :  { %1389 = vmatpush.bf16.msra.mxu2 %v2139_v38  ;;  %1402 = vmatpush.bf16.msra.mxu3 %v2142_v47 }
 0x44a   :  { %1364 = vmatpush.bf16.msra.mxu0 %v2146_v52  ;;  %1377 = vmatpush.bf16.msra.mxu1 %v2149_v58  ;;  %v2599_v52 = vld [vmem:[#allocation19_spill] sm:$0xff] }
 0x44b   :  { %1390 = vmatpush.bf16.msra.mxu2 %v2153_v63  ;;  %1403 = vmatpush.bf16.msra.mxu3 %v2155_v2  ;;  %v2600_v2 = vld [vmem:[#allocation14_spill] sm:$0xff] }
 0x44e   :  { %1365 = vmatpush.bf16.msra.mxu0 %v2162_v18  ;;  %1378 = vmatpush.bf16.msra.mxu1 %v2165_v20  ;;  %v1157_v18 = vrot.slane %v2600_v2, 4 }
 0x44f   :  { %1391 = vmatpush.bf16.msra.mxu2 %v2170_v24  ;;  %1404 = vmatpush.bf16.msra.mxu3 %v2172_v25 }
 0x4ad   :  { %v1111_v23 = vpop.f32.mrf.mxu0  ;;  %v1124_v27 = vpop.f32.mrf.mxu1 }
 0x4ae   :  { %v1112_v28 = vadd.f32 %v1111_v23, %v2266_v33  ;;  %v1125_v35 = vadd.f32 %v1124_v27, %v2268_v42 }
 0x4b0   :  { %v1162_v40 = vadd.f32 %v1154_v31, %v1112_v28  ;;  %v1163_v43 = vadd.f32 %v1155_v39, %v1125_v35 }
 0x4b2   :  { %v1687_v46 = vmul.f32 -1.442695, %v1162_v40  ;;  %v1688_v50 = vmul.f32 -1.442695, %v1163_v43 }
 0x4b4   :  { %1840 = vpow2.f32 %v1687_v46  ;;  %v1137_v55 = vpop.f32.mrf.mxu2  ;;  %v1150_v56 = vpop.f32.mrf.mxu3 }
 0x4b5   :  { %1842 = vpow2.f32 %v1688_v50  ;;  %v1138_v60 = vadd.f32 %v1137_v55, %v2278_v8  ;;  %v1113_v1 = vpop.f32.mrf.mxu0  ;;  %v1126_v7 = vpop.f32.mrf.mxu1  ;;  %v1151_v58 = vadd.f32 %v1150_v56, %v2599_v52 }
 0x4b6   :  { %v1283_v7 = vrot.slane %v2418_v61, 6 }
 0x4b7   :  { %v1164_v11 = vadd.f32 %v1156_v0, %v1138_v60  ;;  %v1165_v25 = vadd.f32 %v1157_v18, %v1151_v58  ;;  %v1282_v0 = vrot.slane %v2413_v26, 6 }
 0x4b9   :  { %v1689_v15 = vmul.f32 -1.442695, %v1164_v11 }
 0x4ba   :  { %v1841_v16 = vpop.eup %1840 }
 0x4bb   :  { %v1843_v21 = vpop.eup %1842  ;;  %v1175_v30 = vadd.f32 1.0, %v1841_v16  ;;  %1844 = vpow2.f32 %v1689_v15 }
 0x4bc   :  { %v1176_v32 = vadd.f32 1.0, %v1843_v21  ;;  %v1139_v38 = vpop.f32.mrf.mxu2  ;;  %v1152_v47 = vpop.f32.mrf.mxu3 }
 0x4bd   :  { %1846 = vrcp.f32 %v1175_v30  ;;  %v1189_v9 = vand.u32 2147483648, %v1175_v30  ;;  %v1187_v29 = vand.u32 2147483647, %v1175_v30  ;;  %vm1183_vm12 = vweird.f32 %v1175_v30 }
 0x4be   :  { %1848 = vrcp.f32 %v1176_v32  ;;  %v1204_v48 = vand.u32 2147483648, %v1176_v32  ;;  %v1202_v53 = vand.u32 2147483647, %v1176_v32  ;;  %vm1198_vm13 = vweird.f32 %v1176_v32 }
 0x4bf   :  { %v1190_v37 = vor.u32 1.1754944e-38, %v1189_v9  ;;  %vm1188_vm0 = vcmp.eq.f32.partialorder %v1187_v29, 8.507059e+37  ;;  %v1284_v47 = vrot.slane %v2427_v49, 6 }
 0x4c0   :  { %v1205_v4 = vor.u32 1.1754944e-38, %v1204_v48  ;;  %vm1203_vm1 = vcmp.eq.f32.partialorder %v1202_v53, 8.507059e+37 }
 0x4c1   :  { %v1845_v63 = vpop.eup %1844 }
 0x4c2   :  { %v1177_v20 = vadd.f32 1.0, %v1845_v63 }
 0x4c3   :  { %v1847_v24 = vpop.eup %1846 }
 0x4c4   :  { %v1849_v57 = vpop.eup %1848  ;;  %v1179_v62 = vmul.f32 %v1847_v24, %v1175_v30  ;;  %1850 = vrcp.f32 %v1177_v20  ;;  %vm1184_vm10 = vweird.f32 %v1847_v24  ;;  %v1219_v31 = vand.u32 2147483648, %v1177_v20 }
 0x4c5   :  { %v1194_v41 = vmul.f32 %v1849_v57, %v1176_v32  ;;  %1852 = vtanh.f32 %v1165_v25  ;;  %vm1199_vm11 = vweird.f32 %v1849_v57  ;;  %vm1185_vm14 = vmor %vm1183_vm12, %vm1184_vm10  ;;  %vm1213_vm3 = vweird.f32 %v1177_v20 }
 0x4c6   :  { %v1180_v19 = vsub.f32 1.0, %v1179_v62  ;;  %vm1200_vm15 = vmor %vm1198_vm13, %vm1199_vm11  ;;  %v1217_v35 = vand.u32 2147483647, %v1177_v20  ;;  %v1220_v40 = vor.u32 1.1754944e-38, %v1219_v31 }
 0x4c7   :  { %v1195_v3 = vsub.f32 1.0, %v1194_v41 }
 0x4c8   :  { %v1181_v34 = vmul.f32 %v1847_v24, %v1180_v19  ;;  %vm1218_vm5 = vcmp.eq.f32.partialorder %v1217_v35, 8.507059e+37  ;;  %v1742_v19 = vld [vmem:[%s2560_s5] ss:$0 sm:$0xff] }
 0x4c9   :  { %v1196_v59 = vmul.f32 %v1849_v57, %v1195_v3  ;;  %v1285_v3 = vrot.slane %v2600_v2, 6  ;;  %1476 = vrot.lane.b32.xlu0 %v1742_v19, %s2002_s25 }
 0x4ca   :  { %v1851_v51 = vpop.eup %1850  ;;  %v1182_v5 = vadd.f32 %v1847_v24, %v1181_v34 }
 0x4cb   :  { %v1209_v36 = vmul.f32 %v1851_v51, %v1177_v20  ;;  %v1197_v54 = vadd.f32 %v1849_v57, %v1196_v59  ;;  %v1853_v6 = vpop.eup %1852  ;;  %vm1214_vm2 = vweird.f32 %v1851_v51 }
 0x4cc   :  { %v1186_v17 = vsel %vm1185_vm14, %v1847_v24, %v1182_v5  ;;  %vm1215_vm4 = vmor %vm1213_vm3, %vm1214_vm2 }
 0x4cd   :  { %v1210_v44 = vsub.f32 1.0, %v1209_v36  ;;  %v1191_v13 = vsel %vm1188_vm0, %v1190_v37, %v1186_v17  ;;  %v1201_v12 = vsel %vm1200_vm15, %v1849_v57, %v1197_v54 }
 0x4ce   :  { %v1206_v14 = vsel %vm1203_vm1, %v1205_v4, %v1201_v12  ;;  %v1225_v45 = vmul.f32 %v1853_v6, %v1191_v13 }
 0x4cf   :  { %v1224_v22 = vmul.f32 %v1206_v14, %v2483_v10  ;;  %v1211_v23 = vmul.f32 %v1851_v51, %v1210_v44 }
 0x4d1   :  { %v2527_v27 = vadd.f32 %v1225_v45, %v1224_v22  ;;  %v1212_v28 = vadd.f32 %v1851_v51, %v1211_v23 }
 0x4d3   :  { %1854 = vtanh.f32 %v2527_v27  ;;  %v1216_v39 = vsel %vm1215_vm4, %v1851_v51, %v1212_v28 }
 0x4d4   :  { %v1221_v46 = vsel %vm1218_vm5, %v1220_v40, %v1216_v39 }
 0x4d9   :  { %v1855_v43 = vpop.eup %1854 }
 0x4da   :  { %v1228_v50 = vmul.f32 %v1855_v43, %v1221_v46 }
 0x4dc   :  { %v1229_v55 = vpack.c.bf16 %v1228_v50, %v1228_v50 }
 0x4de   :  { %1238 = vmatmul.bf16.vlgmr.msrb.gmra.mxu0 %v1229_v55  ;;  %1251 = vmatmul.bf16.vlgmr.msrb.gmra.mxu1 %v1229_v55 }
 0x4df   :  { %1264 = vmatmul.bf16.vlgmr.msrb.gmra.mxu2 %v1229_v55  ;;  %1277 = vmatmul.bf16.vlgmr.msrb.gmra.mxu3 %v1229_v55 }
 0x55b   :  { %v1239_v10 = vpop.f32.mrf.mxu0  ;;  %v1252_v56 = vpop.f32.mrf.mxu1 }
 0x55c   :  { %v1240_v60 = vadd.f32 %v1239_v10, %v2266_v33  ;;  %v1253_v1 = vadd.f32 %v1252_v56, %v2268_v42 }
 0x55e   :  { %v1290_v11 = vadd.f32 %v1282_v0, %v1240_v60  ;;  %v1291_v15 = vadd.f32 %v1283_v7, %v1253_v1 }
 0x560   :  { %v1690_v16 = vmul.f32 -1.442695, %v1290_v11  ;;  %v1691_v21 = vmul.f32 -1.442695, %v1291_v15 }
 0x562   :  { %1856 = vpow2.f32 %v1690_v16  ;;  %v1265_v30 = vpop.f32.mrf.mxu2  ;;  %v1278_v32 = vpop.f32.mrf.mxu3 }
 0x563   :  { %1858 = vpow2.f32 %v1691_v21  ;;  %v1266_v38 = vadd.f32 %v1265_v30, %v2278_v8  ;;  %v1241_v58 = vpop.f32.mrf.mxu0  ;;  %v1254_v63 = vpop.f32.mrf.mxu1  ;;  %v1279_v41 = vadd.f32 %v1278_v32, %v2599_v52 }
 0x565   :  { %v1292_v18 = vadd.f32 %v1284_v47, %v1266_v38  ;;  %v1293_v34 = vadd.f32 %v1285_v3, %v1279_v41 }
 0x567   :  { %v1692_v26 = vmul.f32 -1.442695, %v1292_v18 }
 0x568   :  { %v1857_v20 = vpop.eup %1856 }
 0x569   :  { %v1859_v24 = vpop.eup %1858  ;;  %v1303_v25 = vadd.f32 1.0, %v1857_v20  ;;  %1860 = vpow2.f32 %v1692_v26 }
 0x56a   :  { %v1304_v61 = vadd.f32 1.0, %v1859_v24  ;;  %v1267_v57 = vpop.f32.mrf.mxu2  ;;  %v1280_v62 = vpop.f32.mrf.mxu3 }
 0x56b   :  { %1862 = vrcp.f32 %v1303_v25  ;;  %v1317_v36 = vand.u32 2147483648, %v1303_v25  ;;  %v1315_v4 = vand.u32 2147483647, %v1303_v25  ;;  %vm1311_vm8 = vweird.f32 %v1303_v25 }
 0x56c   :  { %1864 = vrcp.f32 %v1304_v61  ;;  %v1332_v37 = vand.u32 2147483648, %v1304_v61  ;;  %v1330_v2 = vand.u32 2147483647, %v1304_v61  ;;  %vm1326_vm9 = vweird.f32 %v1304_v61 }
 0x56d   :  { %v1318_v12 = vor.u32 1.1754944e-38, %v1317_v36  ;;  %vm1316_vm12 = vcmp.eq.f32.partialorder %v1315_v4, 8.507059e+37 }
 0x56e   :  { %v1333_v45 = vor.u32 1.1754944e-38, %v1332_v37  ;;  %vm1331_vm13 = vcmp.eq.f32.partialorder %v1330_v2, 8.507059e+37 }
 0x56f   :  { %v1861_v49 = vpop.eup %1860 }
 0x570   :  { %v1305_v9 = vadd.f32 1.0, %v1861_v49 }
 0x571   :  { %v1863_v48 = vpop.eup %1862 }
 0x572   :  { %v1865_v29 = vpop.eup %1864  ;;  %v1307_v59 = vmul.f32 %v1863_v48, %v1303_v25  ;;  %1866 = vrcp.f32 %v1305_v9  ;;  %vm1312_vm6 = vweird.f32 %v1863_v48  ;;  %v1347_v10 = vand.u32 2147483648, %v1305_v9 }
 0x573   :  { %v1322_v53 = vmul.f32 %v1865_v29, %v1304_v61  ;;  %1868 = vtanh.f32 %v1293_v34  ;;  %vm1327_vm7 = vweird.f32 %v1865_v29  ;;  %vm1313_vm10 = vmor %vm1311_vm8, %vm1312_vm6  ;;  %vm1341_vm15 = vweird.f32 %v1305_v9 }
 0x574   :  { %v1308_v51 = vsub.f32 1.0, %v1307_v59  ;;  %vm1328_vm11 = vmor %vm1326_vm9, %vm1327_vm7  ;;  %v1345_v56 = vand.u32 2147483647, %v1305_v9  ;;  %v1348_v0 = vor.u32 1.1754944e-38, %v1347_v10  ;;  %v1477_v10 = vpop.permute.xlu0 %1476 }
 0x575   :  { %v1323_v5 = vsub.f32 1.0, %v1322_v53 }
 0x576   :  { %v1309_v54 = vmul.f32 %v1863_v48, %v1308_v51  ;;  %vm1346_vm1 = vcmp.eq.f32.partialorder %v1345_v56, 8.507059e+37 }
 0x577   :  { %v1324_v17 = vmul.f32 %v1865_v29, %v1323_v5 }
 0x578   :  { %v1867_v6 = vpop.eup %1866  ;;  %v1310_v44 = vadd.f32 %v1863_v48, %v1309_v54 }
 0x579   :  { %v1337_v13 = vmul.f32 %v1867_v6, %v1305_v9  ;;  %v1325_v14 = vadd.f32 %v1865_v29, %v1324_v17  ;;  %v1869_v23 = vpop.eup %1868  ;;  %vm1342_vm14 = vweird.f32 %v1867_v6 }
 0x57a   :  { %v1314_v22 = vsel %vm1313_vm10, %v1863_v48, %v1310_v44  ;;  %vm1343_vm0 = vmor %vm1341_vm15, %vm1342_vm14  ;;  %vm1484_vm14 = vcmask 517120  }
 0x57b   :  { %v1338_v28 = vsub.f32 1.0, %v1337_v13  ;;  %v1319_v31 = vsel %vm1316_vm12, %v1318_v12, %v1314_v22  ;;  %v1329_v35 = vsel %vm1328_vm11, %v1865_v29, %v1325_v14 }
 0x57c   :  { %v1334_v39 = vsel %vm1331_vm13, %v1333_v45, %v1329_v35  ;;  %v1353_v40 = vmul.f32 %v1869_v23, %v1319_v31 }
 0x57d   :  { %v1352_v43 = vmul.f32 %v1334_v39, %v2527_v27  ;;  %v1339_v46 = vmul.f32 %v1867_v6, %v1338_v28 }
 0x57f   :  { %v2543_v50 = vadd.f32 %v1353_v40, %v1352_v43  ;;  %v1340_v55 = vadd.f32 %v1867_v6, %v1339_v46 }
 0x581   :  { %1870 = vtanh.f32 %v2543_v50  ;;  %v1344_v60 = vsel %vm1343_vm0, %v1867_v6, %v1340_v55 }
 0x582   :  { %v1349_v7 = vsel %vm1346_vm1, %v1348_v0, %v1344_v60  ;;  %vm1512_vm1 = vcmask 1024  }
 0x587   :  { %v1871_v1 = vpop.eup %1870 }
 0x588   :  { %v1356_v11 = vmul.f32 %v1871_v1, %v1349_v7  ;;  %v1743_v7 = vld [vmem:[#allocation2] ss:$0 sm:$0xff] }
 0x58a   :  { %v1357_v15 = vpack.c.bf16 %v1356_v11, %v1356_v11 }
 0x58c   :  { %1366 = vmatmul.bf16.vlgmr.msra.gmra.mxu0 %v1357_v15  ;;  %1379 = vmatmul.bf16.vlgmr.msra.gmra.mxu1 %v1357_v15 }
 0x58d   :  { %1392 = vmatmul.bf16.vlgmr.msra.gmra.mxu2 %v1357_v15  ;;  %1405 = vmatmul.bf16.vlgmr.msra.gmra.mxu3 %v1357_v15 }
 0x609   :  { %v1367_v27 = vpop.f32.mrf.mxu0  ;;  %v1380_v16 = vpop.f32.mrf.mxu1 }
 0x60a   :  { %v1368_v21 = vadd.f32 %v1367_v27, %v2266_v33  ;;  %v1381_v30 = vadd.f32 %v1380_v16, %v2268_v42 }
 0x60c   :  { %v1693_v32 = vmul.f32 -1.442695, %v1368_v21  ;;  %v1694_v38 = vmul.f32 -1.442695, %v1381_v30 }
 0x60e   :  { %1872 = vpow2.f32 %v1693_v32 }
 0x60f   :  { %1874 = vpow2.f32 %v1694_v38 }
 0x610   :  { %v1393_v47 = vpop.f32.mrf.mxu2  ;;  %v1406_v58 = vpop.f32.mrf.mxu3 }
 0x611   :  { %v1394_v63 = vadd.f32 %v1393_v47, %v2278_v8  ;;  %v1369_v18 = vpop.f32.mrf.mxu0  ;;  %v1382_v26 = vpop.f32.mrf.mxu1  ;;  %v1407_v49 = vadd.f32 %v1406_v58, %v2599_v52 }
 0x613   :  { %v1695_v20 = vmul.f32 -1.442695, %v1394_v63 }
 0x614   :  { %v1873_v24 = vpop.eup %1872 }
 0x615   :  { %v1875_v25 = vpop.eup %1874  ;;  %v1419_v61 = vadd.f32 1.0, %v1873_v24  ;;  %1876 = vpow2.f32 %v1695_v20 }
 0x616   :  { %v1420_v57 = vadd.f32 1.0, %v1875_v25 }
 0x617   :  { %1878 = vrcp.f32 %v1419_v61  ;;  %v1433_v29 = vand.u32 2147483648, %v1419_v61  ;;  %v1431_v51 = vand.u32 2147483647, %v1419_v61  ;;  %vm1427_vm4 = vweird.f32 %v1419_v61 }
 0x618   :  { %1880 = vrcp.f32 %v1420_v57  ;;  %v1395_v33 = vpop.f32.mrf.mxu2  ;;  %v1408_v42 = vpop.f32.mrf.mxu3  ;;  %v1448_v59 = vand.u32 2147483648, %v1420_v57  ;;  %v1446_v36 = vand.u32 2147483647, %v1420_v57  ;;  %vm1442_vm5 = vweird.f32 %v1420_v57 }
 0x619   :  { %v1434_v52 = vor.u32 1.1754944e-38, %v1433_v29  ;;  %vm1432_vm8 = vcmp.eq.f32.partialorder %v1431_v51, 8.507059e+37 }
 0x61a   :  { %v1449_v2 = vor.u32 1.1754944e-38, %v1448_v59  ;;  %vm1447_vm9 = vcmp.eq.f32.partialorder %v1446_v36, 8.507059e+37 }
 0x61b   :  { %v1877_v62 = vpop.eup %1876 }
 0x61c   :  { %v1421_v41 = vadd.f32 1.0, %v1877_v62 }
 0x61d   :  { %v1879_v19 = vpop.eup %1878 }
 0x61e   :  { %v1881_v3 = vpop.eup %1880  ;;  %v1423_v9 = vmul.f32 %v1879_v19, %v1419_v61  ;;  %1882 = vrcp.f32 %v1421_v41  ;;  %vm1428_vm2 = vweird.f32 %v1879_v19  ;;  %v1463_v39 = vand.u32 2147483648, %v1421_v41 }
 0x61f   :  { %v1438_v8 = vmul.f32 %v1881_v3, %v1420_v57  ;;  %1884 = vtanh.f32 %v1407_v49  ;;  %vm1443_vm3 = vweird.f32 %v1881_v3  ;;  %vm1429_vm6 = vmor %vm1427_vm4, %vm1428_vm2  ;;  %vm1457_vm11 = vweird.f32 %v1421_v41 }
 0x620   :  { %v1424_v48 = vsub.f32 1.0, %v1423_v9  ;;  %vm1444_vm7 = vmor %vm1442_vm5, %vm1443_vm3  ;;  %v1461_v40 = vand.u32 2147483647, %v1421_v41  ;;  %v1464_v46 = vor.u32 1.1754944e-38, %v1463_v39 }
 0x621   :  { %v1439_v34 = vsub.f32 1.0, %v1438_v8 }
 0x622   :  { %v1425_v53 = vmul.f32 %v1879_v19, %v1424_v48  ;;  %vm1462_vm13 = vcmp.eq.f32.partialorder %v1461_v40, 8.507059e+37 }
 0x623   :  { %v1440_v5 = vmul.f32 %v1881_v3, %v1439_v34 }
 0x624   :  { %v1883_v37 = vpop.eup %1882  ;;  %v1426_v54 = vadd.f32 %v1879_v19, %v1425_v53 }
 0x625   :  { %v1441_v4 = vadd.f32 %v1881_v3, %v1440_v5  ;;  %v1453_v17 = vmul.f32 %v1883_v37, %v1421_v41  ;;  %v1885_v44 = vpop.eup %1884  ;;  %vm1458_vm10 = vweird.f32 %v1883_v37 }
 0x626   :  { %v1430_v6 = vsel %vm1429_vm6, %v1879_v19, %v1426_v54  ;;  %vm1459_vm12 = vmor %vm1457_vm11, %vm1458_vm10 }
 0x627   :  { %v1435_v13 = vsel %vm1432_vm8, %v1434_v52, %v1430_v6  ;;  %v1445_v12 = vsel %vm1444_vm7, %v1881_v3, %v1441_v4  ;;  %v1454_v14 = vsub.f32 1.0, %v1453_v17 }
 0x628   :  { %v1469_v45 = vmul.f32 %v1885_v44, %v1435_v13  ;;  %v1450_v22 = vsel %vm1447_vm9, %v1449_v2, %v1445_v12 }
 0x629   :  { %v1455_v23 = vmul.f32 %v1883_v37, %v1454_v14  ;;  %v1468_v28 = vmul.f32 %v1450_v22, %v2543_v50 }
 0x62b   :  { %v1470_v31 = vadd.f32 %v1469_v45, %v1468_v28  ;;  %v1456_v35 = vadd.f32 %v1883_v37, %v1455_v23 }
 0x62d   :  { %1886 = vtanh.f32 %v1470_v31  ;;  %v1460_v43 = vsel %vm1459_vm12, %v1883_v37, %v1456_v35 }
 0x62e   :  { %v1465_v56 = vsel %vm1462_vm13, %v1464_v46, %v1460_v43 }
 0x633   :  { %v1887_v55 = vpop.eup %1886 }
 0x634   :  { %v1472_v60 = vmul.f32 %v1887_v55, %v1465_v56 }
 0x636   :  { %v1479_v0 = vmul.f32 %v1477_v10, %v1472_v60 }
 0x638   :  { %1481 = vrot.lane.b32.xlu0 %v1479_v0, %s2002_s25 }
 0x6aa   :  { %v1482_v50 = vpop.permute.xlu0 %1481 }
 0x6ab   :  { %v1485_v1 = vsel %vm1484_vm14, %v1482_v50, 0.0 }
 0x6ac   :  { %1486 = vadd.xlane.f32.xlu1 %v1485_v1 }
 0x71f   :  { %v1487_v11 = vpop.xlane.xlu1 %1486 }
 0x720   :  { %v1492_v15 = vadd.f32 %v1743_v7, %v1487_v11 }
 0x722   :  { %v1696_v27 = vmul.f32 -1.442695, %v1492_v15 }
 0x724   :  { %1888 = vpow2.f32 %v1696_v27 }
 0x72a   :  { %v1889_v16 = vpop.eup %1888 }
 0x72b   :  { %v1496_v21 = vadd.f32 1.0, %v1889_v16 }
 0x72d   :  { %1890 = vrcp.f32 %v1496_v21  ;;  %v1508_v47 = vand.u32 2147483648, %v1496_v21  ;;  %v1506_v63 = vand.u32 2147483647, %v1496_v21  ;;  %vm1502_vm0 = vweird.f32 %v1496_v21 }
 0x72f   :  { %v1509_v26 = vor.u32 1.1754944e-38, %v1508_v47  ;;  %vm1507_vm3 = vcmp.eq.f32.partialorder %v1506_v63, 8.507059e+37 }
 0x733   :  { %v1891_v30 = vpop.eup %1890 }
 0x734   :  { %v1498_v32 = vmul.f32 %v1891_v30, %v1496_v21  ;;  %vm1503_vm15 = vweird.f32 %v1891_v30 }
 0x735   :  { %vm1504_vm2 = vmor %vm1502_vm0, %vm1503_vm15 }
 0x736   :  { %v1499_v38 = vsub.f32 1.0, %v1498_v32 }
 0x738   :  { %v1500_v58 = vmul.f32 %v1891_v30, %v1499_v38 }
 0x73a   :  { %v1501_v18 = vadd.f32 %v1891_v30, %v1500_v58 }
 0x73c   :  { %v1505_v20 = vsel %vm1504_vm2, %v1891_v30, %v1501_v18 }
 0x73d   :  { %v1510_v24 = vsel %vm1507_vm3, %v1509_v26, %v1505_v20 }
 0x73e   :  { %1513 = vst.msk [vmem:[%s2562_s7] sm:$0x3] %vm1512_vm1, %v1510_v24 }
 0x73f   :  { %1518 = vsyncpa [#allocation4], 1 }
 0x740   :  { %1519 = vsyncpa [#allocation6], 1 }
 0x741   :  { %1520 = vsyncpa [#allocation9], 1 }

</bundles_post_ra>
